<compile_context>
chip_gen: v7x
topology: tpu7x:2x2x1
jax: 0.10.0
libtpu: 0.0.40
codegen_flags: <defaults>
</compile_context>

<pallas_src>
import numpy as np
import jax
import jax.numpy as jnp
from jax.experimental import pallas as pl
from jax.experimental.pallas import tpu as pltpu


def get_gaussian_kernel(ksize: int, sigma: float) -> np.ndarray:
    """Replicates cv2.getGaussianKernel(ksize, sigma): column vector, sum == 1."""
    i = np.arange(ksize, dtype=np.float64)
    center = (ksize - 1) / 2.0
    g = np.exp(-((i - center) ** 2) / (2.0 * sigma * sigma))
    g = g / g.sum()
    return g.reshape(ksize, 1)


def _round_up(n: int, m: int) -> int:
    return ((n + m - 1) // m) * m


def _sublane_multiple(dtype) -> int:
    # 8 sublanes for 32-bit, 16 for 16-bit, 32 for 8-bit (packed dtypes).
    return max(8, 32 // jnp.dtype(dtype).itemsize)


def _tpu_vmem_and_cores():
    """Best-effort query of physical VMEM bytes and TensorCores per chip."""
    phys = 128 << 20
    cores = 1
    try:
        info = pltpu.get_tpu_info()
        phys = int(getattr(info, "vmem_capacity_bytes", phys) or phys)
        for name in ("num_cores", "core_count", "num_tensorcores",
                     "tensor_core_count", "num_tensor_cores"):
            v = getattr(info, name, None)
            if v:
                cores = int(v)
                break
    except Exception:
        pass
    return phys, cores


def _plan_tiling(P, H, W, oH, oW, io_dtype):
    """Pick Pblk (lanes per block, multiple of 128), padded P, and vmem limit."""
    phys, cores = _tpu_vmem_and_cores()
    budget = (phys * 3) // 8              # ~48 MiB on 128-MiB parts, ~24 MiB on v7x
    vmem_limit = max(32 << 20, min(phys // 2, 128 << 20))

    io_bytes = jnp.dtype(io_dtype).itemsize
    sub_io = _sublane_multiple(io_dtype)
    # Bytes per group of 128 planes (lanes), with (sublane, 128-lane) tile rounding.
    grp_in = H * _round_up(W, sub_io) * 128 * io_bytes
    grp_out = oH * _round_up(oW, sub_io) * 128 * io_bytes
    # f32 working values the compiler materializes (x_f32, h, interior accum).
    grp_f32 = 3 * max(H, oH) * _round_up(max(W, oW), 8) * 128 * 4
    # 2x double-buffering only for the pipelined input/output blocks.
    per_group = 2 * grp_in + 2 * grp_out + grp_f32

    # TODO(synk): if per_group alone exceeds the budget (very large H*W), tile
    # H into row strips with a K//2 halo instead of relying on one block.
    pblk = max(128, (budget // per_group) * 128)
    pblk = min(pblk, _round_up(P, 128))

    # Prefer an even grid length only on parts with >= 2 TensorCores (v7x).
    steps = -(-P // pblk)
    if cores >= 2 and steps > 1 and steps % 2 == 1:
        for cand in range(pblk - 128, pblk // 2 - 1, -128):
            if cand >= 128 and (-(-P // cand)) % 2 == 0:
                pblk = cand
                break

    p_pad = _round_up(P, pblk)
    return pblk, p_pad, vmem_limit


def _make_blur_kernel(g1, K, pad, H, W, oH, oW):
    """Kernel body for one (H, W, Pblk) planes-on-lanes block.

    Separable Gaussian: horizontal K-tap pass (sublane slices) then vertical
    K-tap pass (major-axis slices).  Replication padding is folded into
    adjusted tap weights on the `pad` border columns / rows — no padded
    scratch copies.
    """

    def taps_for(pos, size):
        # Effective (source index -> weight) map with replication clamping.
        w = {}
        for t in range(K):
            i = min(max(pos + t - pad, 0), size - 1)
            w[i] = w.get(i, 0.0) + g1[t]
        return sorted(w.items())

    def kernel(x_ref, o_ref):
        x = x_ref[...].astype(jnp.float32)          # (H, W, Pblk)

        # ---- horizontal pass (W axis = sublanes) -> h: (H, oW, Pblk) ----
        pieces = []
        j = 0
        while j < oW:
            if j >= pad and (j - pad + K) <= W:
                # Interior run: plain shifted slices of x, no clamping.
                run = (pad + W - K) - j + 1
                base = j - pad
                acc = g1[0] * x[:, base:base + run, :]
                for t in range(1, K):
                    acc = acc + g1[t] * x[:, base + t:base + t + run, :]
                pieces.append(acc)
                j += run
            else:
                # Border column: replication folded into per-source weights.
                items = taps_for(j, W)
                i0, w0 = items[0]
                acc = w0 * x[:, i0:i0 + 1, :]
                for i, wv in items[1:]:
                    acc = acc + wv * x[:, i:i + 1, :]
                pieces.append(acc)
                j += 1
        h = pieces[0] if len(pieces) == 1 else jnp.concatenate(pieces, axis=1)

        # ---- vertical pass (H axis = major), written straight to o_ref ----
        r = 0
        while r < oH:
            if r >= pad and (r - pad + K) <= H:
                run = (pad + H - K) - r + 1
                base = r - pad
                acc = g1[0] * h[base:base + run, :, :]
                for t in range(1, K):
                    acc = acc + g1[t] * h[base + t:base + t + run, :, :]
                o_ref[r:r + run, :, :] = acc.astype(o_ref.dtype)
                r += run
            else:
                items = taps_for(r, H)
                i0, w0 = items[0]
                acc = w0 * h[i0:i0 + 1, :, :]
                for i, wv in items[1:]:
                    acc = acc + wv * h[i:i + 1, :, :]
                o_ref[r:r + 1, :, :] = acc.astype(o_ref.dtype)
                r += 1

    return kernel


def gaussian_kernel_forward(x: jnp.ndarray, kernel_len: int = 5, nsig: float = 20.0):
    """x: (N, C, H, W) NCHW. Returns (N, C, H, W) for odd kernel_len
    (H+1, W+1 for even kernel_len, matching the PyTorch module)."""
    N, C, H, W = x.shape
    K = kernel_len
    pad = K // 2
    oH = H + 2 * pad - K + 1
    oW = W + 2 * pad - K + 1
    g1 = tuple(float(v) for v in get_gaussian_kernel(K, nsig).reshape(-1))

    P = N * C
    pblk, p_pad, vmem_limit = _plan_tiling(P, H, W, oH, oW, x.dtype)

    # Planes-on-lanes layout: (N, C, H, W) -> (H, W, P_pad).  Wrapper-side
    # transpose/pad is layout plumbing; padded planes are zeros and sliced off.
    xt = jnp.transpose(x.reshape(P, H, W), (1, 2, 0))
    if p_pad != P:
        xt = jnp.pad(xt, ((0, 0), (0, 0), (0, p_pad - P)))

    kernel = _make_blur_kernel(g1, K, pad, H, W, oH, oW)

    out_t = pl.pallas_call(
        kernel,
        out_shape=jax.ShapeDtypeStruct((oH, oW, p_pad), x.dtype),
        grid_spec=pltpu.PrefetchScalarGridSpec(
            num_scalar_prefetch=0,
            grid=(p_pad // pblk,),
            in_specs=[pl.BlockSpec((H, W, pblk), lambda i: (0, 0, i))],
            out_specs=pl.BlockSpec((oH, oW, pblk), lambda i: (0, 0, i)),
        ),
        compiler_params=pltpu.CompilerParams(
            dimension_semantics=("parallel",),
            vmem_limit_bytes=vmem_limit,
        ),
    )(xt)

    out = jnp.transpose(out_t[:, :, :P], (2, 0, 1)).reshape(N, C, oH, oW)
    return out


if __name__ == "__main__":
    kernel_len = 5
    nsig = 20.0
    N, C, H, W = 2, 4, 16, 16

    key = jax.random.PRNGKey(0)
    x = jax.random.normal(key, (N, C, H, W), dtype=jnp.float32)

    out = jax.block_until_ready(gaussian_kernel_forward(x, kernel_len, nsig))

    # Independent reference: edge-pad then per-channel VALID conv via lax.conv.
    pad = kernel_len // 2
    g1d = get_gaussian_kernel(kernel_len, nsig)
    w = jnp.asarray((g1d @ g1d.T).astype(np.float32)).reshape(1, 1, kernel_len, kernel_len)
    x_pad = jnp.pad(x, ((0, 0), (0, 0), (pad, pad), (pad, pad)), mode="edge")
    ref = jax.lax.conv(
        x_pad.reshape(N * C, 1, H + 2 * pad, W + 2 * pad), w, (1, 1), "VALID",
        precision=jax.lax.Precision.HIGHEST,
    ).reshape(N, C, H, W)

    assert out.shape == (N, C, H, W)
    np.testing.assert_allclose(np.asarray(out), np.asarray(ref), atol=1e-5, rtol=1e-5)

    # bf16 I/O path (HBM-bandwidth win on v6e/v7x) — smoke check only.
    out_bf16 = jax.block_until_ready(
        gaussian_kernel_forward(x.astype(jnp.bfloat16), kernel_len, nsig))
    assert out_bf16.shape == (N, C, H, W) and out_bf16.dtype == jnp.bfloat16
    assert bool(jnp.all(jnp.isfinite(out_bf16.astype(jnp.float32))))

    print("KERNEL_OK")
</pallas_src>

<mosaic_0001>
module attributes {stable_mosaic.version = 11 : i64} {
  func.func @kernel(%arg0: i32, %arg1: memref<16x16x128xf32, #tpu.memory_space<vmem>>, %arg2: memref<16x16x128xf32, #tpu.memory_space<vmem>>) attributes {dimension_semantics = [#tpu.dimension_semantics<parallel>], iteration_bounds = array<i64: 1>, scalar_prefetch = 0 : i64, scratch_operands = 0 : i64, tpu.core_type = #tpu.core_type<tc>, window_params = [{transform_indices = @transform_0, window_bounds = array<i64: 16, 16, 128>}, {transform_indices = @transform_1, window_bounds = array<i64: 16, 16, 128>}]} {
    %c0 = arith.constant 0 : index
    %c0_0 = arith.constant 0 : index
    %c0_1 = arith.constant 0 : index
    %0 = vector.load %arg1[%c0, %c0_0, %c0_1] : memref<16x16x128xf32, #tpu.memory_space<vmem>>, vector<16x16x128xf32>
    %1 = vector.extract_strided_slice %0 {offsets = [0, 0, 0], sizes = [16, 1, 128], strides = [1, 1, 1]} : vector<16x16x128xf32> to vector<16x1x128xf32>
    %cst = arith.constant 0.600250065 : f32
    %2 = vector.broadcast %cst : f32 to vector<16x1x128xf32>
    %3 = arith.mulf %2, %1 : vector<16x1x128xf32>
    %4 = vector.extract_strided_slice %0 {offsets = [0, 1, 0], sizes = [16, 1, 128], strides = [1, 1, 1]} : vector<16x16x128xf32> to vector<16x1x128xf32>
    %cst_2 = arith.constant 0.200249717 : f32
    %5 = vector.broadcast %cst_2 : f32 to vector<16x1x128xf32>
    %6 = arith.mulf %5, %4 : vector<16x1x128xf32>
    %7 = arith.addf %3, %6 : vector<16x1x128xf32>
    %8 = vector.extract_strided_slice %0 {offsets = [0, 2, 0], sizes = [16, 1, 128], strides = [1, 1, 1]} : vector<16x16x128xf32> to vector<16x1x128xf32>
    %cst_3 = arith.constant 0.199500188 : f32
    %9 = vector.broadcast %cst_3 : f32 to vector<16x1x128xf32>
    %10 = arith.mulf %9, %8 : vector<16x1x128xf32>
    %11 = arith.addf %7, %10 : vector<16x1x128xf32>
    %12 = vector.extract_strided_slice %0 {offsets = [0, 0, 0], sizes = [16, 1, 128], strides = [1, 1, 1]} : vector<16x16x128xf32> to vector<16x1x128xf32>
    %cst_4 = arith.constant 0.399749905 : f32
    %13 = vector.broadcast %cst_4 : f32 to vector<16x1x128xf32>
    %14 = arith.mulf %13, %12 : vector<16x1x128xf32>
    %15 = vector.extract_strided_slice %0 {offsets = [0, 1, 0], sizes = [16, 1, 128], strides = [1, 1, 1]} : vector<16x16x128xf32> to vector<16x1x128xf32>
    %cst_5 = arith.constant 0.20050019 : f32
    %16 = vector.broadcast %cst_5 : f32 to vector<16x1x128xf32>
    %17 = arith.mulf %16, %15 : vector<16x1x128xf32>
    %18 = arith.addf %14, %17 : vector<16x1x128xf32>
    %19 = vector.extract_strided_slice %0 {offsets = [0, 2, 0], sizes = [16, 1, 128], strides = [1, 1, 1]} : vector<16x16x128xf32> to vector<16x1x128xf32>
    %cst_6 = arith.constant 0.200249717 : f32
    %20 = vector.broadcast %cst_6 : f32 to vector<16x1x128xf32>
    %21 = arith.mulf %20, %19 : vector<16x1x128xf32>
    %22 = arith.addf %18, %21 : vector<16x1x128xf32>
    %23 = vector.extract_strided_slice %0 {offsets = [0, 3, 0], sizes = [16, 1, 128], strides = [1, 1, 1]} : vector<16x16x128xf32> to vector<16x1x128xf32>
    %cst_7 = arith.constant 0.199500188 : f32
    %24 = vector.broadcast %cst_7 : f32 to vector<16x1x128xf32>
    %25 = arith.mulf %24, %23 : vector<16x1x128xf32>
    %26 = arith.addf %22, %25 : vector<16x1x128xf32>
    %27 = vector.extract_strided_slice %0 {offsets = [0, 0, 0], sizes = [16, 12, 128], strides = [1, 1, 1]} : vector<16x16x128xf32> to vector<16x12x128xf32>
    %cst_8 = arith.constant 0.199500188 : f32
    %28 = vector.broadcast %cst_8 : f32 to vector<16x12x128xf32>
    %29 = arith.mulf %28, %27 : vector<16x12x128xf32>
    %30 = vector.extract_strided_slice %0 {offsets = [0, 1, 0], sizes = [16, 12, 128], strides = [1, 1, 1]} : vector<16x16x128xf32> to vector<16x12x128xf32>
    %cst_9 = arith.constant 0.200249717 : f32
    %31 = vector.broadcast %cst_9 : f32 to vector<16x12x128xf32>
    %32 = arith.mulf %31, %30 : vector<16x12x128xf32>
    %33 = arith.addf %29, %32 : vector<16x12x128xf32>
    %34 = vector.extract_strided_slice %0 {offsets = [0, 2, 0], sizes = [16, 12, 128], strides = [1, 1, 1]} : vector<16x16x128xf32> to vector<16x12x128xf32>
    %cst_10 = arith.constant 0.20050019 : f32
    %35 = vector.broadcast %cst_10 : f32 to vector<16x12x128xf32>
    %36 = arith.mulf %35, %34 : vector<16x12x128xf32>
    %37 = arith.addf %33, %36 : vector<16x12x128xf32>
    %38 = vector.extract_strided_slice %0 {offsets = [0, 3, 0], sizes = [16, 12, 128], strides = [1, 1, 1]} : vector<16x16x128xf32> to vector<16x12x128xf32>
    %cst_11 = arith.constant 0.200249717 : f32
    %39 = vector.broadcast %cst_11 : f32 to vector<16x12x128xf32>
    %40 = arith.mulf %39, %38 : vector<16x12x128xf32>
    %41 = arith.addf %37, %40 : vector<16x12x128xf32>
    %42 = vector.extract_strided_slice %0 {offsets = [0, 4, 0], sizes = [16, 12, 128], strides = [1, 1, 1]} : vector<16x16x128xf32> to vector<16x12x128xf32>
    %cst_12 = arith.constant 0.199500188 : f32
    %43 = vector.broadcast %cst_12 : f32 to vector<16x12x128xf32>
    %44 = arith.mulf %43, %42 : vector<16x12x128xf32>
    %45 = arith.addf %41, %44 : vector<16x12x128xf32>
    %46 = vector.extract_strided_slice %0 {offsets = [0, 12, 0], sizes = [16, 1, 128], strides = [1, 1, 1]} : vector<16x16x128xf32> to vector<16x1x128xf32>
    %cst_13 = arith.constant 0.199500188 : f32
    %47 = vector.broadcast %cst_13 : f32 to vector<16x1x128xf32>
    %48 = arith.mulf %47, %46 : vector<16x1x128xf32>
    %49 = vector.extract_strided_slice %0 {offsets = [0, 13, 0], sizes = [16, 1, 128], strides = [1, 1, 1]} : vector<16x16x128xf32> to vector<16x1x128xf32>
    %cst_14 = arith.constant 0.200249717 : f32
    %50 = vector.broadcast %cst_14 : f32 to vector<16x1x128xf32>
    %51 = arith.mulf %50, %49 : vector<16x1x128xf32>
    %52 = arith.addf %48, %51 : vector<16x1x128xf32>
    %53 = vector.extract_strided_slice %0 {offsets = [0, 14, 0], sizes = [16, 1, 128], strides = [1, 1, 1]} : vector<16x16x128xf32> to vector<16x1x128xf32>
    %cst_15 = arith.constant 0.20050019 : f32
    %54 = vector.broadcast %cst_15 : f32 to vector<16x1x128xf32>
    %55 = arith.mulf %54, %53 : vector<16x1x128xf32>
    %56 = arith.addf %52, %55 : vector<16x1x128xf32>
    %57 = vector.extract_strided_slice %0 {offsets = [0, 15, 0], sizes = [16, 1, 128], strides = [1, 1, 1]} : vector<16x16x128xf32> to vector<16x1x128xf32>
    %cst_16 = arith.constant 0.399749905 : f32
    %58 = vector.broadcast %cst_16 : f32 to vector<16x1x128xf32>
    %59 = arith.mulf %58, %57 : vector<16x1x128xf32>
    %60 = arith.addf %56, %59 : vector<16x1x128xf32>
    %61 = vector.extract_strided_slice %0 {offsets = [0, 13, 0], sizes = [16, 1, 128], strides = [1, 1, 1]} : vector<16x16x128xf32> to vector<16x1x128xf32>
    %cst_17 = arith.constant 0.199500188 : f32
    %62 = vector.broadcast %cst_17 : f32 to vector<16x1x128xf32>
    %63 = arith.mulf %62, %61 : vector<16x1x128xf32>
    %64 = vector.extract_strided_slice %0 {offsets = [0, 14, 0], sizes = [16, 1, 128], strides = [1, 1, 1]} : vector<16x16x128xf32> to vector<16x1x128xf32>
    %cst_18 = arith.constant 0.200249717 : f32
    %65 = vector.broadcast %cst_18 : f32 to vector<16x1x128xf32>
    %66 = arith.mulf %65, %64 : vector<16x1x128xf32>
    %67 = arith.addf %63, %66 : vector<16x1x128xf32>
    %68 = vector.extract_strided_slice %0 {offsets = [0, 15, 0], sizes = [16, 1, 128], strides = [1, 1, 1]} : vector<16x16x128xf32> to vector<16x1x128xf32>
    %cst_19 = arith.constant 0.600250065 : f32
    %69 = vector.broadcast %cst_19 : f32 to vector<16x1x128xf32>
    %70 = arith.mulf %69, %68 : vector<16x1x128xf32>
    %71 = arith.addf %67, %70 : vector<16x1x128xf32>
    %72 = tpu.concatenate %11, %26, %45, %60, %71 in 1 : vector<16x1x128xf32>, vector<16x1x128xf32>, vector<16x12x128xf32>, vector<16x1x128xf32>, vector<16x1x128xf32> -> vector<16x16x128xf32>
    %73 = vector.extract_strided_slice %72 {offsets = [0, 0, 0], sizes = [1, 16, 128], strides = [1, 1, 1]} : vector<16x16x128xf32> to vector<1x16x128xf32>
    %cst_20 = arith.constant 0.600250065 : f32
    %74 = vector.broadcast %cst_20 : f32 to vector<1x16x128xf32>
    %75 = arith.mulf %74, %73 : vector<1x16x128xf32>
    %76 = vector.extract_strided_slice %72 {offsets = [1, 0, 0], sizes = [1, 16, 128], strides = [1, 1, 1]} : vector<16x16x128xf32> to vector<1x16x128xf32>
    %cst_21 = arith.constant 0.200249717 : f32
    %77 = vector.broadcast %cst_21 : f32 to vector<1x16x128xf32>
    %78 = arith.mulf %77, %76 : vector<1x16x128xf32>
    %79 = arith.addf %75, %78 : vector<1x16x128xf32>
    %80 = vector.extract_strided_slice %72 {offsets = [2, 0, 0], sizes = [1, 16, 128], strides = [1, 1, 1]} : vector<16x16x128xf32> to vector<1x16x128xf32>
    %cst_22 = arith.constant 0.199500188 : f32
    %81 = vector.broadcast %cst_22 : f32 to vector<1x16x128xf32>
    %82 = arith.mulf %81, %80 : vector<1x16x128xf32>
    %83 = arith.addf %79, %82 : vector<1x16x128xf32>
    %c0_23 = arith.constant 0 : index
    %c0_24 = arith.constant 0 : index
    %c0_25 = arith.constant 0 : index
    %84 = vector.load %arg2[%c0_23, %c0_24, %c0_25] : memref<16x16x128xf32, #tpu.memory_space<vmem>>, vector<1x16x128xf32>
    tpu.vector_store %arg2[%c0_23, %c0_24, %c0_25], %83 {strides = array<i32>} : memref<16x16x128xf32, #tpu.memory_space<vmem>>, vector<1x16x128xf32>,
    %85 = vector.extract_strided_slice %72 {offsets = [0, 0, 0], sizes = [1, 16, 128], strides = [1, 1, 1]} : vector<16x16x128xf32> to vector<1x16x128xf32>
    %cst_26 = arith.constant 0.399749905 : f32
    %86 = vector.broadcast %cst_26 : f32 to vector<1x16x128xf32>
    %87 = arith.mulf %86, %85 : vector<1x16x128xf32>
    %88 = vector.extract_strided_slice %72 {offsets = [1, 0, 0], sizes = [1, 16, 128], strides = [1, 1, 1]} : vector<16x16x128xf32> to vector<1x16x128xf32>
    %cst_27 = arith.constant 0.20050019 : f32
    %89 = vector.broadcast %cst_27 : f32 to vector<1x16x128xf32>
    %90 = arith.mulf %89, %88 : vector<1x16x128xf32>
    %91 = arith.addf %87, %90 : vector<1x16x128xf32>
    %92 = vector.extract_strided_slice %72 {offsets = [2, 0, 0], sizes = [1, 16, 128], strides = [1, 1, 1]} : vector<16x16x128xf32> to vector<1x16x128xf32>
    %cst_28 = arith.constant 0.200249717 : f32
    %93 = vector.broadcast %cst_28 : f32 to vector<1x16x128xf32>
    %94 = arith.mulf %93, %92 : vector<1x16x128xf32>
    %95 = arith.addf %91, %94 : vector<1x16x128xf32>
    %96 = vector.extract_strided_slice %72 {offsets = [3, 0, 0], sizes = [1, 16, 128], strides = [1, 1, 1]} : vector<16x16x128xf32> to vector<1x16x128xf32>
    %cst_29 = arith.constant 0.199500188 : f32
    %97 = vector.broadcast %cst_29 : f32 to vector<1x16x128xf32>
    %98 = arith.mulf %97, %96 : vector<1x16x128xf32>
    %99 = arith.addf %95, %98 : vector<1x16x128xf32>
    %c1 = arith.constant 1 : index
    %c0_30 = arith.constant 0 : index
    %c0_31 = arith.constant 0 : index
    %100 = vector.load %arg2[%c1, %c0_30, %c0_31] : memref<16x16x128xf32, #tpu.memory_space<vmem>>, vector<1x16x128xf32>
    tpu.vector_store %arg2[%c1, %c0_30, %c0_31], %99 {strides = array<i32>} : memref<16x16x128xf32, #tpu.memory_space<vmem>>, vector<1x16x128xf32>,
    %101 = vector.extract_strided_slice %72 {offsets = [0, 0, 0], sizes = [12, 16, 128], strides = [1, 1, 1]} : vector<16x16x128xf32> to vector<12x16x128xf32>
    %cst_32 = arith.constant 0.199500188 : f32
    %102 = vector.broadcast %cst_32 : f32 to vector<12x16x128xf32>
    %103 = arith.mulf %102, %101 : vector<12x16x128xf32>
    %104 = vector.extract_strided_slice %72 {offsets = [1, 0, 0], sizes = [12, 16, 128], strides = [1, 1, 1]} : vector<16x16x128xf32> to vector<12x16x128xf32>
    %cst_33 = arith.constant 0.200249717 : f32
    %105 = vector.broadcast %cst_33 : f32 to vector<12x16x128xf32>
    %106 = arith.mulf %105, %104 : vector<12x16x128xf32>
    %107 = arith.addf %103, %106 : vector<12x16x128xf32>
    %108 = vector.extract_strided_slice %72 {offsets = [2, 0, 0], sizes = [12, 16, 128], strides = [1, 1, 1]} : vector<16x16x128xf32> to vector<12x16x128xf32>
    %cst_34 = arith.constant 0.20050019 : f32
    %109 = vector.broadcast %cst_34 : f32 to vector<12x16x128xf32>
    %110 = arith.mulf %109, %108 : vector<12x16x128xf32>
    %111 = arith.addf %107, %110 : vector<12x16x128xf32>
    %112 = vector.extract_strided_slice %72 {offsets = [3, 0, 0], sizes = [12, 16, 128], strides = [1, 1, 1]} : vector<16x16x128xf32> to vector<12x16x128xf32>
    %cst_35 = arith.constant 0.200249717 : f32
    %113 = vector.broadcast %cst_35 : f32 to vector<12x16x128xf32>
    %114 = arith.mulf %113, %112 : vector<12x16x128xf32>
    %115 = arith.addf %111, %114 : vector<12x16x128xf32>
    %116 = vector.extract_strided_slice %72 {offsets = [4, 0, 0], sizes = [12, 16, 128], strides = [1, 1, 1]} : vector<16x16x128xf32> to vector<12x16x128xf32>
    %cst_36 = arith.constant 0.199500188 : f32
    %117 = vector.broadcast %cst_36 : f32 to vector<12x16x128xf32>
    %118 = arith.mulf %117, %116 : vector<12x16x128xf32>
    %119 = arith.addf %115, %118 : vector<12x16x128xf32>
    %c2 = arith.constant 2 : index
    %c0_37 = arith.constant 0 : index
    %c0_38 = arith.constant 0 : index
    %120 = vector.load %arg2[%c2, %c0_37, %c0_38] : memref<16x16x128xf32, #tpu.memory_space<vmem>>, vector<12x16x128xf32>
    tpu.vector_store %arg2[%c2, %c0_37, %c0_38], %119 {strides = array<i32>} : memref<16x16x128xf32, #tpu.memory_space<vmem>>, vector<12x16x128xf32>,
    %121 = vector.extract_strided_slice %72 {offsets = [12, 0, 0], sizes = [1, 16, 128], strides = [1, 1, 1]} : vector<16x16x128xf32> to vector<1x16x128xf32>
    %cst_39 = arith.constant 0.199500188 : f32
    %122 = vector.broadcast %cst_39 : f32 to vector<1x16x128xf32>
    %123 = arith.mulf %122, %121 : vector<1x16x128xf32>
    %124 = vector.extract_strided_slice %72 {offsets = [13, 0, 0], sizes = [1, 16, 128], strides = [1, 1, 1]} : vector<16x16x128xf32> to vector<1x16x128xf32>
    %cst_40 = arith.constant 0.200249717 : f32
    %125 = vector.broadcast %cst_40 : f32 to vector<1x16x128xf32>
    %126 = arith.mulf %125, %124 : vector<1x16x128xf32>
    %127 = arith.addf %123, %126 : vector<1x16x128xf32>
    %128 = vector.extract_strided_slice %72 {offsets = [14, 0, 0], sizes = [1, 16, 128], strides = [1, 1, 1]} : vector<16x16x128xf32> to vector<1x16x128xf32>
    %cst_41 = arith.constant 0.20050019 : f32
    %129 = vector.broadcast %cst_41 : f32 to vector<1x16x128xf32>
    %130 = arith.mulf %129, %128 : vector<1x16x128xf32>
    %131 = arith.addf %127, %130 : vector<1x16x128xf32>
    %132 = vector.extract_strided_slice %72 {offsets = [15, 0, 0], sizes = [1, 16, 128], strides = [1, 1, 1]} : vector<16x16x128xf32> to vector<1x16x128xf32>
    %cst_42 = arith.constant 0.399749905 : f32
    %133 = vector.broadcast %cst_42 : f32 to vector<1x16x128xf32>
    %134 = arith.mulf %133, %132 : vector<1x16x128xf32>
    %135 = arith.addf %131, %134 : vector<1x16x128xf32>
    %c14 = arith.constant 14 : index
    %c0_43 = arith.constant 0 : index
    %c0_44 = arith.constant 0 : index
    %136 = vector.load %arg2[%c14, %c0_43, %c0_44] : memref<16x16x128xf32, #tpu.memory_space<vmem>>, vector<1x16x128xf32>
    tpu.vector_store %arg2[%c14, %c0_43, %c0_44], %135 {strides = array<i32>} : memref<16x16x128xf32, #tpu.memory_space<vmem>>, vector<1x16x128xf32>,
    %137 = vector.extract_strided_slice %72 {offsets = [13, 0, 0], sizes = [1, 16, 128], strides = [1, 1, 1]} : vector<16x16x128xf32> to vector<1x16x128xf32>
    %cst_45 = arith.constant 0.199500188 : f32
    %138 = vector.broadcast %cst_45 : f32 to vector<1x16x128xf32>
    %139 = arith.mulf %138, %137 : vector<1x16x128xf32>
    %140 = vector.extract_strided_slice %72 {offsets = [14, 0, 0], sizes = [1, 16, 128], strides = [1, 1, 1]} : vector<16x16x128xf32> to vector<1x16x128xf32>
    %cst_46 = arith.constant 0.200249717 : f32
    %141 = vector.broadcast %cst_46 : f32 to vector<1x16x128xf32>
    %142 = arith.mulf %141, %140 : vector<1x16x128xf32>
    %143 = arith.addf %139, %142 : vector<1x16x128xf32>
    %144 = vector.extract_strided_slice %72 {offsets = [15, 0, 0], sizes = [1, 16, 128], strides = [1, 1, 1]} : vector<16x16x128xf32> to vector<1x16x128xf32>
    %cst_47 = arith.constant 0.600250065 : f32
    %145 = vector.broadcast %cst_47 : f32 to vector<1x16x128xf32>
    %146 = arith.mulf %145, %144 : vector<1x16x128xf32>
    %147 = arith.addf %143, %146 : vector<1x16x128xf32>
    %c15 = arith.constant 15 : index
    %c0_48 = arith.constant 0 : index
    %c0_49 = arith.constant 0 : index
    %148 = vector.load %arg2[%c15, %c0_48, %c0_49] : memref<16x16x128xf32, #tpu.memory_space<vmem>>, vector<1x16x128xf32>
    tpu.vector_store %arg2[%c15, %c0_48, %c0_49], %147 {strides = array<i32>} : memref<16x16x128xf32, #tpu.memory_space<vmem>>, vector<1x16x128xf32>,
    return
  }
  func.func @transform_0(%arg0: i32) -> (i32, i32, i32) {
    %c0_i32 = arith.constant 0 : i32
    %c0_i32_0 = arith.constant 0 : i32
    %c0_i32_1 = arith.constant 0 : i32
    return %c0_i32, %c0_i32_0, %arg0 : i32, i32, i32
  }
  func.func @transform_1(%arg0: i32) -> (i32, i32, i32) {
    %c0_i32 = arith.constant 0 : i32
    %c0_i32_0 = arith.constant 0 : i32
    %c0_i32_1 = arith.constant 0 : i32
    return %c0_i32, %c0_i32_0, %arg0 : i32, i32, i32
  }
}

</mosaic_0001>

<bundles_post_ra>
// kernel: tpu_custom_call.1
= control target key start
LH: loop header
LB: loop body
LE: loop exit
PB: predicated region body
PF: predicated region fallthrough
CT: control target
= control target key end

     0   :  { %6 = vsyncpa [#allocation3], 0  ;;  %s2538_s0 = inlined_call_operand.hbm [shape: f32[16,16,128], index: 0, kind: input, shape index: {}]   ;;  %s2539_s1 = inlined_call_operand.hbm [shape: f32[16,16,128], index: 1, kind: output, shape index: {}]  }
   0x1   :  { %7 = vsyncpa [#allocation4], 0  ;;  %s1754_s6 = smov [#allocation2]   ;;  %s1706_s10 = scalar_lea.hbm %s2538_s0, 4096 }
   0x2   :  { %s13_s7 = sshll.u32 %s1754_s6, 4  ;;  %p1707_p0 = scmp.ne.s32.totalorder %s2538_s0, %s1706_s10  ;;  %s14_s7 = int_to_ptr.vmem [resolvable:$true] %s13_s7 }
   0x3   :  { %p1710_p1 = scmp.lt.u32.totalorder %s1706_s10, %s2538_s0 }
   0x5   :  { %p1712_p2 = pnand %p1710_p1, %p1707_p0 }
   0x7   :  { %1715 = shalt.err (!%p1712_p2)
}
   0x8   :  { %s1716_s15 = scalar_lea.vmem %s14_s7, 4096  ;;  %p1721_p4 = scmp.lt.s32.totalorder %s14_s7, %s14_s7 }
   0x9   :  { %p1717_p3 = scmp.ne.s32.totalorder %s14_s7, %s1716_s15  ;;  %p1722_p5 = scmp.lt.s32.totalorder %s1716_s15, %s1716_s15 }
   0xb   :  { %p1723_p6 = por %p1722_p5, %p1721_p4 }
   0xd   :  { %p1724_p7 = pnand %p1723_p6, %p1717_p3 }
   0xf   :  { %1727 = shalt.err (!%p1724_p7)
}
  0x10   :  { %s1755_s16 = smov 128   ;;  %s1756_s17 = smov 8  }
  0x11   :  { %19 = dma.hbm_to_vmem [thread:$0]  %s2538_s0, 4096, %s14_s7, [#allocation3], %s1755_s16, %s1755_s16, %s1756_s17  }
  0x12   :  { %1750 = dma.done.wait [#allocation3], 4096  }
  0x13   :  { %1751 = vsyncadd [#allocation3], 4294963200  ;;  %v23_v0 = vld [vmem:[#allocation2] sm:$0xff]  ;;  %v25_v1 = vld [vmem:[#allocation2 + $0x10] sm:$0xff]  ;;  %vm471_vm0 = vcmask 1046528   ;;  %vm600_vm1 = vcmask 1045504  }
  0x14   :  { %v27_v2 = vld [vmem:[#allocation2 + $0x20] sm:$0xff]  ;;  %v55_v3 = vmul.f32 0.60025007, %v23_v0  ;;  %v29_v4 = vld [vmem:[#allocation2 + $0x30] sm:$0xff]  ;;  %v56_v5 = vmul.f32 0.60025007, %v25_v1 }
  0x15   :  { %v57_v6 = vmul.f32 0.60025007, %v27_v2  ;;  %v58_v7 = vmul.f32 0.60025007, %v29_v4  ;;  %v1783_v8 = vmul.f32 0.20024972, %v23_v0 }
  0x16   :  { %v1785_v9 = vmul.f32 0.20024972, %v25_v1  ;;  %v1787_v10 = vmul.f32 0.20024972, %v27_v2  ;;  %v1789_v11 = vmul.f32 0.20024972, %v29_v4 }
  0x17   :  { %v1791_v12 = vmul.f32 0.19950019, %v23_v0  ;;  %v103_v13 = vrot.slane %v1783_v8, 1  ;;  %v1795_v15 = vmul.f32 0.19950019, %v25_v1  ;;  %v327_v41 = vrot.slane %v1783_v8, 2 }
  0x18   :  { %v104_v14 = vrot.slane %v1785_v9, 1  ;;  %v1797_v16 = vmul.f32 0.19950019, %v27_v2  ;;  %v105_v17 = vrot.slane %v1787_v10, 1  ;;  %v106_v18 = vrot.slane %v1789_v11, 1  ;;  %v1839_v48 = vld [vmem:[#allocation2 + $0x8] sm:$0xff] }
  0x19   :  { %v1801_v19 = vmul.f32 0.19950019, %v29_v4  ;;  %v183_v20 = vrot.slane %v1791_v12, 2  ;;  %v135_v21 = vadd.f32 %v103_v13, %v55_v3  ;;  %v184_v23 = vrot.slane %v1795_v15, 2  ;;  %v1844_v53 = vld [vmem:[#allocation2 + $0x18] sm:$0xff]  ;;  %v1846_v54 = vld [vmem:[#allocation2 + $0x28] sm:$0xff] }
  0x1a   :  { %v136_v22 = vadd.f32 %v104_v14, %v56_v5  ;;  %v185_v24 = vrot.slane %v1797_v16, 2  ;;  %v137_v25 = vadd.f32 %v105_v17, %v57_v6  ;;  %v138_v26 = vadd.f32 %v106_v18, %v58_v7  ;;  %v1848_v55 = vld [vmem:[#allocation2 + $0x38] sm:$0xff]  ;;  %s1757_s0 = smov [#allocation5]  }
  0x1b   :  { %v186_v27 = vrot.slane %v1801_v19, 2  ;;  %v1815_v28 = vadd.f32 %v183_v20, %v135_v21  ;;  %v231_v30 = vmul.f32 0.3997499, %v23_v0  ;;  %v232_v31 = vmul.f32 0.3997499, %v25_v1  ;;  %s1690_s20 = sshll.u32 %s1757_s0, 4  ;;  %s1691_s20 = int_to_ptr.vmem [resolvable:$true] %s1690_s20 }
  0x1c   :  { %v1817_v29 = vadd.f32 %v184_v23, %v136_v22  ;;  %v1819_v32 = vadd.f32 %v185_v24, %v137_v25  ;;  %v233_v33 = vmul.f32 0.3997499, %v27_v2  ;;  %v234_v34 = vmul.f32 0.3997499, %v29_v4  ;;  %s1728_s21 = scalar_lea.vmem %s1691_s20, 4096  ;;  %p1733_p9 = scmp.lt.s32.totalorder %s1691_s20, %s1691_s20 }
  0x1d   :  { %v1821_v35 = vmul.f32 0.20050019, %v23_v0  ;;  %v1823_v36 = vadd.f32 %v186_v27, %v138_v26  ;;  %v1825_v37 = vmul.f32 0.20050019, %v25_v1  ;;  %v1827_v38 = vmul.f32 0.20050019, %v27_v2  ;;  %p1729_p8 = scmp.ne.s32.totalorder %s1691_s20, %s1728_s21  ;;  %p1734_p10 = scmp.lt.s32.totalorder %s1728_s21, %s1728_s21 }
  0x1e   :  { %v1829_v39 = vmul.f32 0.20050019, %v29_v4  ;;  %v328_v42 = vrot.slane %v1785_v9, 2  ;;  %v329_v43 = vrot.slane %v1787_v10, 2  ;;  %v330_v47 = vrot.slane %v1789_v11, 2 }
  0x1f   :  { %v279_v40 = vrot.slane %v1821_v35, 1  ;;  %v280_v44 = vrot.slane %v1825_v37, 1  ;;  %v281_v45 = vrot.slane %v1827_v38, 1  ;;  %v375_v50 = vrot.slane %v1791_v12, 3  ;;  %p1735_p11 = por %p1734_p10, %p1733_p9 }
  0x20   :  { %v282_v46 = vrot.slane %v1829_v39, 1  ;;  %v376_v51 = vrot.slane %v1795_v15, 3  ;;  %v377_v52 = vrot.slane %v1797_v16, 3  ;;  %v378_v59 = vrot.slane %v1801_v19, 3 }
  0x21   :  { %v311_v49 = vadd.f32 %v279_v40, %v231_v30  ;;  %v312_v56 = vadd.f32 %v280_v44, %v232_v31  ;;  %v313_v57 = vadd.f32 %v281_v45, %v233_v33  ;;  %v1852_v61 = vmul.f32 0.19950019, %v1839_v48  ;;  %p1736_p12 = pnand %p1735_p11, %p1729_p8 }
  0x22   :  { %v314_v58 = vadd.f32 %v282_v46, %v234_v34  ;;  %v1855_v62 = vmul.f32 0.19950019, %v1844_v53  ;;  %v1858_v63 = vmul.f32 0.19950019, %v1846_v54  ;;  %v1861_v3 = vmul.f32 0.19950019, %v1848_v55 }
  0x23   :  { %v359_v60 = vadd.f32 %v327_v41, %v311_v49  ;;  %v360_v0 = vadd.f32 %v328_v42, %v312_v56  ;;  %v361_v1 = vadd.f32 %v329_v43, %v313_v57  ;;  %vm713_vm2 = vcmask 1044480  }
  0x24   :  { %v362_v2 = vadd.f32 %v330_v47, %v314_v58  ;;  %v1866_v5 = vmul.f32 0.20024972, %v1839_v48  ;;  %v1869_v6 = vmul.f32 0.20024972, %v1844_v53  ;;  %v1872_v7 = vmul.f32 0.20024972, %v1846_v54 }
  0x25   :  { %v1863_v4 = vadd.f32 %v375_v50, %v359_v60  ;;  %v1874_v20 = vadd.f32 %v376_v51, %v360_v0  ;;  %v1876_v21 = vadd.f32 %v377_v52, %v361_v1  ;;  %v1881_v23 = vmul.f32 0.20024972, %v1848_v55 }
  0x26   :  { %v1878_v22 = vadd.f32 %v378_v59, %v362_v2  ;;  %v472_v24 = vrot.slane %v1866_v5, 1  ;;  %v474_v25 = vrot.slane %v1869_v6, 1  ;;  %v476_v26 = vrot.slane %v1872_v7, 1 }
  0x27   :  { %v1887_v27 = vmul.f32 0.20050019, %v1839_v48  ;;  %v478_v30 = vrot.slane %v1881_v23, 1  ;;  %v1891_v31 = vmul.f32 0.20050019, %v1844_v53  ;;  %v601_v34 = vrot.slane %v1821_v35, 2 }
  0x28   :  { %v1894_v33 = vmul.f32 0.20050019, %v1846_v54  ;;  %vm842_vm3 = vcmask 1043456   ;;  %v473_v40 = vsel %vm471_vm0, %v103_v13, %v472_v24  ;;  %v475_v41 = vsel %vm471_vm0, %v104_v14, %v474_v25 }
  0x29   :  { %v477_v42 = vsel %vm471_vm0, %v105_v17, %v476_v26  ;;  %v1913_v35 = vmul.f32 0.20050019, %v1848_v55  ;;  %v479_v13 = vsel %vm471_vm0, %v106_v18, %v478_v30  ;;  %v536_v43 = vadd.f32 %v473_v40, %v1791_v12 }
  0x2a   :  { %v538_v44 = vadd.f32 %v475_v41, %v1795_v15  ;;  %v540_v14 = vadd.f32 %v477_v42, %v1797_v16  ;;  %v542_v45 = vadd.f32 %v479_v13, %v1801_v19  ;;  %v602_v46 = vrot.slane %v1887_v27, 2 }
  0x2b   :  { %v604_v17 = vrot.slane %v1825_v37, 2  ;;  %v605_v47 = vrot.slane %v1891_v31, 2  ;;  %v607_v49 = vrot.slane %v1827_v38, 2  ;;  %v608_v50 = vrot.slane %v1894_v33, 2 }
  0x2c   :  { %v610_v18 = vrot.slane %v1829_v39, 2  ;;  %v611_v51 = vrot.slane %v1913_v35, 2  ;;  %v603_v52 = vsel %vm600_vm1, %v601_v34, %v602_v46  ;;  %v714_v37 = vrot.slane %v1783_v8, 3 }
  0x2d   :  { %v606_v56 = vsel %vm600_vm1, %v604_v17, %v605_v47  ;;  %v715_v57 = vrot.slane %v1866_v5, 3  ;;  %vm1372_vm4 = vcmask 1040384   ;;  %v609_v38 = vsel %vm600_vm1, %v607_v49, %v608_v50 }
  0x2e   :  { %v612_v39 = vsel %vm600_vm1, %v610_v18, %v611_v51  ;;  %v681_v58 = vadd.f32 %v603_v52, %v536_v43  ;;  %v683_v59 = vadd.f32 %v606_v56, %v538_v44  ;;  %v685_v60 = vadd.f32 %v609_v38, %v540_v14 }
  0x2f   :  { %v687_v0 = vadd.f32 %v612_v39, %v542_v45  ;;  %v716_v1 = vsel %vm713_vm2, %v714_v37, %v715_v57  ;;  %v717_v8 = vrot.slane %v1785_v9, 3  ;;  %v718_v2 = vrot.slane %v1869_v6, 3 }
  0x30   :  { %v720_v34 = vrot.slane %v1787_v10, 3  ;;  %v721_v40 = vrot.slane %v1872_v7, 3  ;;  %v723_v41 = vrot.slane %v1789_v11, 3  ;;  %vm1195_vm5 = vcmask 1041408  }
  0x31   :  { %v724_v42 = vrot.slane %v1881_v23, 3  ;;  %v794_v13 = vadd.f32 %v716_v1, %v681_v58  ;;  %v843_v43 = vrot.slane %v1791_v12, 4  ;;  %v844_v44 = vrot.slane %v1852_v61, 4 }
  0x32   :  { %v719_v14 = vsel %vm713_vm2, %v717_v8, %v718_v2  ;;  %v722_v9 = vsel %vm713_vm2, %v720_v34, %v721_v40  ;;  %v846_v45 = vrot.slane %v1795_v15, 4  ;;  %v847_v10 = vrot.slane %v1855_v62, 4 }
  0x33   :  { %v725_v17 = vsel %vm713_vm2, %v723_v41, %v724_v42  ;;  %v796_v49 = vadd.f32 %v719_v14, %v683_v59  ;;  %v798_v11 = vadd.f32 %v722_v9, %v685_v60  ;;  %v845_v18 = vsel %vm842_vm3, %v843_v43, %v844_v44 }
  0x34   :  { %v800_v52 = vadd.f32 %v725_v17, %v687_v0  ;;  %v848_v56 = vsel %vm842_vm3, %v846_v45, %v847_v10  ;;  %v849_v12 = vrot.slane %v1797_v16, 4  ;;  %v850_v37 = vrot.slane %v1858_v63, 4 }
  0x35   :  { %v852_v38 = vrot.slane %v1801_v19, 4  ;;  %v853_v39 = vrot.slane %v1861_v3, 4  ;;  %v1967_v15 = vadd.f32 %v845_v18, %v794_v13  ;;  %v1969_v58 = vadd.f32 %v848_v56, %v796_v49 }
  0x36   :  { %v851_v59 = vsel %vm842_vm3, %v849_v12, %v850_v37  ;;  %v1131_v60 = vrot.slane %v1863_v4, 7  ;;  %v1132_v0 = vrot.slane %v1874_v20, 7  ;;  %v1133_v1 = vrot.slane %v1876_v21, 7 }
  0x37   :  { %v854_v16 = vsel %vm842_vm3, %v852_v38, %v853_v39  ;;  %v1976_v8 = vadd.f32 %v851_v59, %v798_v11  ;;  %v1134_v19 = vrot.slane %v1878_v22, 7  ;;  %v1196_v34 = vrot.slane %v1967_v15, 6 }
  0x38   :  { %v1980_v41 = vadd.f32 %v854_v16, %v800_v52  ;;  %v1199_v13 = vrot.slane %v1969_v58, 6  ;;  %v1373_v43 = vsel %vm1372_vm4, %v1815_v28, %v1131_v60  ;;  %v1374_v4 = vsel %vm1372_vm4, %v1817_v29, %v1132_v0 }
  0x39   :  { %v1202_v20 = vrot.slane %v1976_v8, 6  ;;  %v1375_v21 = vsel %vm1372_vm4, %v1819_v32, %v1133_v1  ;;  %v1993_v22 = vsel %vm1195_vm5, %v1373_v43, %v1196_v34  ;;  %v537_v28 = vadd.f32 %v472_v24, %v1852_v61 }
  0x3a   :  { %v1996_v14 = vsel %vm1195_vm5, %v1374_v4, %v1199_v13  ;;  %v1437_v9 = vmul.f32 0.60025007, %v1993_v22  ;;  %v539_v32 = vadd.f32 %v474_v25, %v1855_v62  ;;  %v541_v17 = vadd.f32 %v476_v26, %v1858_v63 }
  0x3b   :  { %v2003_v29 = vsel %vm1195_vm5, %v1375_v21, %v1202_v20  ;;  %v2006_v45 = vmul.f32 0.20024972, %v1996_v14  ;;  %v1205_v49 = vrot.slane %v1980_v41, 6  ;;  %v1376_v11 = vsel %vm1372_vm4, %v1823_v36, %v1134_v19 }
  0x3c   :  { %v543_v61 = vadd.f32 %v478_v30, %v1861_v3  ;;  %v682_v24 = vadd.f32 %v602_v46, %v537_v28  ;;  %v2024_v62 = vmul.f32 0.19950019, %v2003_v29  ;;  %v684_v63 = vadd.f32 %v605_v47, %v539_v32 }
  0x3d   :  { %v1441_v18 = vadd.f32 %v2006_v45, %v1437_v9  ;;  %v686_v6 = vadd.f32 %v608_v50, %v541_v17  ;;  %v955_v7 = vmul.f32 0.3997499, %v1839_v48  ;;  %v956_v23 = vmul.f32 0.3997499, %v1844_v53 }
  0x3e   :  { %v688_v36 = vadd.f32 %v611_v51, %v543_v61  ;;  %v795_v3 = vadd.f32 %v715_v57, %v682_v24  ;;  %v2037_v25 = vsel %vm1195_vm5, %v1376_v11, %v1205_v49  ;;  %v797_v27 = vadd.f32 %v718_v2, %v684_v63 }
  0x3f   :  { %v1445_v26 = vadd.f32 %v2024_v62, %v1441_v18  ;;  %v799_v30 = vadd.f32 %v721_v40, %v686_v6  ;;  %v957_v46 = vmul.f32 0.3997499, %v1846_v54  ;;  %v958_v35 = vmul.f32 0.3997499, %v1848_v55 }
  0x40   :  { %v801_v31 = vadd.f32 %v724_v42, %v688_v36  ;;  %v924_v33 = vadd.f32 %v844_v44, %v795_v3  ;;  %v926_v5 = vadd.f32 %v847_v10, %v797_v27  ;;  %v987_v50 = vrot.slane %v955_v7, 3 }
  0x41   :  { %1447 = vst [vmem:[#allocation5] sm:$0xff] %v1445_v26  ;;  %v928_v47 = vadd.f32 %v850_v37, %v799_v30  ;;  %v988_v51 = vrot.slane %v956_v23, 3  ;;  %v989_v52 = vrot.slane %v957_v46, 3  ;;  %v990_v56 = vrot.slane %v958_v35, 3  ;;  %v32_v23 = vld [vmem:[#allocation2 + $0x48] sm:$0xff] }
  0x42   :  { %v930_v57 = vadd.f32 %v853_v39, %v801_v31  ;;  %v1035_v12 = vmul.f32 0.60025007, %v1839_v48  ;;  %v1019_v38 = vadd.f32 %v987_v50, %v682_v24  ;;  %v1036_v2 = vmul.f32 0.60025007, %v1844_v53 }
  0x43   :  { %v1020_v58 = vadd.f32 %v988_v51, %v684_v63  ;;  %v1037_v40 = vmul.f32 0.60025007, %v1846_v54  ;;  %v1021_v42 = vadd.f32 %v989_v52, %v686_v6  ;;  %v1022_v44 = vadd.f32 %v990_v56, %v688_v36 }
  0x44   :  { %v1038_v59 = vmul.f32 0.60025007, %v1848_v55  ;;  %v1067_v60 = vrot.slane %v1035_v12, 2  ;;  %v1068_v10 = vrot.slane %v1036_v2, 2  ;;  %v1197_v0 = vrot.slane %v924_v33, 6 }
  0x45   :  { %v1069_v37 = vrot.slane %v1037_v40, 2  ;;  %v1200_v1 = vrot.slane %v926_v5, 6  ;;  %v1203_v8 = vrot.slane %v928_v47, 6  ;;  %v1206_v19 = vrot.slane %v930_v57, 6 }
  0x46   :  { %v1070_v39 = vrot.slane %v1038_v59, 2  ;;  %v1099_v16 = vadd.f32 %v1067_v60, %v537_v28  ;;  %v1100_v48 = vadd.f32 %v1068_v10, %v539_v32  ;;  %v1198_v53 = vsel %vm1195_vm5, %v1196_v34, %v1197_v0 }
  0x47   :  { %v1101_v41 = vadd.f32 %v1069_v37, %v541_v17  ;;  %v1201_v54 = vsel %vm1195_vm5, %v1199_v13, %v1200_v1  ;;  %v1204_v55 = vsel %vm1195_vm5, %v1202_v20, %v1203_v8  ;;  %v1207_v4 = vsel %vm1195_vm5, %v1205_v49, %v1206_v19  ;;  %v31_v49 = vld [vmem:[#allocation2 + $0x40] sm:$0xff] }
  0x48   :  { %v1102_v43 = vadd.f32 %v1070_v39, %v543_v61  ;;  %v1292_v21 = vrot.slane %v1019_v38, 6  ;;  %v1293_v9 = vrot.slane %v1020_v58, 6  ;;  %v1294_v11 = vrot.slane %v1021_v42, 6 }
  0x49   :  { %v1295_v24 = vrot.slane %v1022_v44, 6  ;;  %v1340_v28 = vrot.slane %v1099_v16, 6  ;;  %v1341_v18 = vrot.slane %v1100_v48, 6  ;;  %v1342_v63 = vrot.slane %v1101_v41, 6 }
  0x4a   :  { %v1343_v32 = vrot.slane %v1102_v43, 6  ;;  %v1405_v17 = vsel %vm600_vm1, %v1198_v53, %v1292_v21  ;;  %v1406_v15 = vsel %vm600_vm1, %v1201_v54, %v1293_v9  ;;  %v1407_v34 = vsel %vm600_vm1, %v1204_v55, %v1294_v11 }
  0x4b   :  { %v1408_v13 = vsel %vm600_vm1, %v1207_v4, %v1295_v24  ;;  %v2057_v20 = vsel %vm471_vm0, %v1405_v17, %v1340_v28  ;;  %v2060_v61 = vsel %vm471_vm0, %v1406_v15, %v1341_v18  ;;  %v2063_v6 = vsel %vm471_vm0, %v1407_v34, %v1342_v63 }
  0x4c   :  { %v1438_v36 = vmul.f32 0.60025007, %v2057_v20  ;;  %v2067_v3 = vmul.f32 0.20024972, %v2037_v25  ;;  %v2070_v7 = vmul.f32 0.20024972, %v2060_v61  ;;  %v2073_v26 = vsel %vm471_vm0, %v1408_v13, %v1343_v32 }
  0x4d   :  { %v59_v27 = vmul.f32 0.60025007, %v31_v49  ;;  %v75_v30 = vmul.f32 0.20024972, %v31_v49  ;;  %v155_v31 = vmul.f32 0.19950019, %v31_v49 }
  0x4e   :  { %v1442_v33 = vadd.f32 %v2070_v7, %v1438_v36  ;;  %v2077_v46 = vmul.f32 0.19950019, %v2063_v6  ;;  %v235_v35 = vmul.f32 0.3997499, %v31_v49  ;;  %v251_v5 = vmul.f32 0.20050019, %v31_v49 }
  0x4f   :  { %v107_v47 = vrot.slane %v75_v30, 1  ;;  %v187_v50 = vrot.slane %v155_v31, 2  ;;  %v331_v51 = vrot.slane %v75_v30, 2  ;;  %v379_v57 = vrot.slane %v155_v31, 3 }
  0x50   :  { %v1446_v52 = vadd.f32 %v2077_v46, %v1442_v33  ;;  %v283_v56 = vrot.slane %v251_v5, 1  ;;  %v427_v12 = vmul.f32 0.19950019, %v32_v23  ;;  %v443_v38 = vmul.f32 0.20024972, %v32_v23 }
  0x51   :  { %v139_v58 = vadd.f32 %v107_v47, %v59_v27  ;;  %v572_v2 = vmul.f32 0.20050019, %v32_v23  ;;  %v613_v40 = vrot.slane %v251_v5, 2  ;;  %v726_v42 = vrot.slane %v75_v30, 3  ;;  %v33_v27 = vld [vmem:[#allocation2 + $0x50] sm:$0xff] }
  0x52   :  { %1448 = vst [vmem:[#allocation5 + $0x8] sm:$0xff] %v1446_v52  ;;  %v315_v44 = vadd.f32 %v283_v56, %v235_v35  ;;  %v480_v59 = vrot.slane %v443_v38, 1  ;;  %v727_v60 = vrot.slane %v443_v38, 3  ;;  %v855_v10 = vrot.slane %v155_v31, 4 }
  0x53   :  { %v219_v37 = vadd.f32 %v187_v50, %v139_v58  ;;  %v614_v0 = vrot.slane %v572_v2, 2  ;;  %v856_v1 = vrot.slane %v427_v12, 4  ;;  %v1449_v39 = vmul.f32 0.3997499, %v1993_v22 }
  0x54   :  { %v363_v16 = vadd.f32 %v331_v51, %v315_v44  ;;  %v481_v8 = vsel %vm471_vm0, %v107_v47, %v480_v59  ;;  %v728_v19 = vsel %vm713_vm2, %v726_v42, %v727_v60  ;;  %v1451_v48 = vmul.f32 0.20050019, %v1996_v14  ;;  %v34_v44 = vld [vmem:[#allocation2 + $0x58] sm:$0xff] }
  0x55   :  { %v544_v41 = vadd.f32 %v481_v8, %v155_v31  ;;  %v615_v53 = vsel %vm600_vm1, %v613_v40, %v614_v0  ;;  %v857_v54 = vsel %vm842_vm3, %v855_v10, %v856_v1  ;;  %v2087_v43 = vmul.f32 0.20024972, %v2003_v29 }
  0x56   :  { %v411_v55 = vadd.f32 %v379_v57, %v363_v16  ;;  %v1453_v4 = vadd.f32 %v1451_v48, %v1449_v39  ;;  %v1459_v21 = vmul.f32 0.19950019, %v2037_v25  ;;  %v545_v9 = vadd.f32 %v480_v59, %v427_v12 }
  0x57   :  { %v689_v11 = vadd.f32 %v615_v53, %v544_v41  ;;  %v959_v24 = vmul.f32 0.3997499, %v32_v23  ;;  %v1039_v28 = vmul.f32 0.60025007, %v32_v23  ;;  %v1450_v18 = vmul.f32 0.3997499, %v2057_v20 }
  0x58   :  { %v1135_v63 = vrot.slane %v411_v55, 7  ;;  %v1457_v32 = vadd.f32 %v2087_v43, %v1453_v4  ;;  %v690_v17 = vadd.f32 %v614_v0, %v545_v9  ;;  %v1452_v15 = vmul.f32 0.20050019, %v2060_v61 }
  0x59   :  { %v2094_v34 = vmul.f32 0.20024972, %v2073_v26  ;;  %v802_v13 = vadd.f32 %v728_v19, %v689_v11  ;;  %v991_v49 = vrot.slane %v959_v24, 3  ;;  %v1071_v36 = vrot.slane %v1039_v28, 2 }
  0x5a   :  { %v1461_v30 = vadd.f32 %v1459_v21, %v1457_v32  ;;  %v803_v31 = vadd.f32 %v727_v60, %v690_v17  ;;  %v1454_v33 = vadd.f32 %v1452_v15, %v1450_v18  ;;  %v2097_v23 = vmul.f32 0.20024972, %v2063_v6 }
  0x5b   :  { %v931_v35 = vadd.f32 %v857_v54, %v802_v13  ;;  %v1377_v5 = vsel %vm1372_vm4, %v219_v37, %v1135_v63  ;;  %v1023_v47 = vadd.f32 %v991_v49, %v690_v17  ;;  %v1103_v50 = vadd.f32 %v1071_v36, %v545_v9 }
  0x5c   :  { %1464 = vst [vmem:[#allocation5 + $0x10] sm:$0xff] %v1461_v30  ;;  %v932_v51 = vadd.f32 %v856_v1, %v803_v31  ;;  %v1458_v57 = vadd.f32 %v2097_v23, %v1454_v33  ;;  %v2102_v52 = vmul.f32 0.19950019, %v2073_v26  ;;  %v76_v56 = vmul.f32 0.20024972, %v33_v27 }
  0x5d   :  { %v2106_v12 = vadd.f32 %v2067_v3, %v2024_v62  ;;  %v2110_v38 = vadd.f32 %v2094_v34, %v2077_v46  ;;  %v1208_v58 = vrot.slane %v931_v35, 6  ;;  %v1296_v2 = vrot.slane %v1023_v47, 6 }
  0x5e   :  { %v1209_v40 = vrot.slane %v932_v51, 6  ;;  %v1462_v42 = vadd.f32 %v2102_v52, %v1458_v57  ;;  %v60_v59 = vmul.f32 0.60025007, %v33_v27  ;;  %v156_v60 = vmul.f32 0.19950019, %v33_v27 }
  0x5f   :  { %v2114_v10 = vsel %vm1195_vm5, %v1377_v5, %v1208_v58  ;;  %v1344_v37 = vrot.slane %v1103_v50, 6  ;;  %v236_v0 = vmul.f32 0.3997499, %v33_v27  ;;  %v252_v1 = vmul.f32 0.20050019, %v33_v27 }
  0x60   :  { %v2117_v62 = vmul.f32 0.20024972, %v2114_v10  ;;  %v1210_v46 = vsel %vm1195_vm5, %v1208_v58, %v1209_v40  ;;  %1465 = vst [vmem:[#allocation5 + $0x18] sm:$0xff] %v1462_v42  ;;  %v108_v39 = vrot.slane %v76_v56, 1  ;;  %v188_v16 = vrot.slane %v156_v60, 2 }
  0x61   :  { %v1409_v8 = vsel %vm600_vm1, %v1210_v46, %v1296_v2  ;;  %v284_v19 = vrot.slane %v252_v1, 1  ;;  %v332_v48 = vrot.slane %v76_v56, 2  ;;  %v444_v41 = vmul.f32 0.20024972, %v34_v44 }
  0x62   :  { %v140_v53 = vadd.f32 %v108_v39, %v60_v59  ;;  %v380_v54 = vrot.slane %v156_v60, 3  ;;  %v428_v55 = vmul.f32 0.19950019, %v34_v44  ;;  %v573_v4 = vmul.f32 0.20050019, %v34_v44 }
  0x63   :  { %v2122_v9 = vadd.f32 %v2117_v62, %v1459_v21  ;;  %v316_v11 = vadd.f32 %v284_v19, %v236_v0  ;;  %v482_v24 = vrot.slane %v444_v41, 1  ;;  %v616_v28 = vrot.slane %v252_v1, 2  ;;  %v35_v0 = vld [vmem:[#allocation2 + $0x60] sm:$0xff] }
  0x64   :  { %v2125_v18 = vsel %vm471_vm0, %v1409_v8, %v1344_v37  ;;  %v617_v63 = vrot.slane %v573_v4, 2  ;;  %v729_v32 = vrot.slane %v76_v56, 3  ;;  %v730_v17 = vrot.slane %v444_v41, 3 }
  0x65   :  { %v364_v15 = vadd.f32 %v332_v48, %v316_v11  ;;  %v483_v13 = vsel %vm471_vm0, %v108_v39, %v482_v24  ;;  %v858_v49 = vrot.slane %v156_v60, 4  ;;  %v859_v36 = vrot.slane %v428_v55, 4 }
  0x66   :  { %v220_v27 = vadd.f32 %v188_v16, %v140_v53  ;;  %v546_v30 = vadd.f32 %v483_v13, %v156_v60  ;;  %v618_v31 = vsel %vm600_vm1, %v616_v28, %v617_v63  ;;  %v1466_v21 = vmul.f32 0.19950019, %v1993_v22  ;;  %v36_v13 = vld [vmem:[#allocation2 + $0x68] sm:$0xff] }
  0x67   :  { %v2131_v33 = vmul.f32 0.20024972, %v2125_v18  ;;  %v412_v35 = vadd.f32 %v380_v54, %v364_v15  ;;  %v731_v5 = vsel %vm713_vm2, %v729_v32, %v730_v17  ;;  %v1530_v47 = vmul.f32 0.20050019, %v2003_v29 }
  0x68   :  { %v691_v50 = vadd.f32 %v618_v31, %v546_v30  ;;  %v1506_v51 = vadd.f32 %v1466_v21, %v2006_v45  ;;  %v547_v57 = vadd.f32 %v482_v24, %v428_v55  ;;  %v960_v56 = vmul.f32 0.3997499, %v34_v44 }
  0x69   :  { %v860_v58 = vsel %vm842_vm3, %v858_v49, %v859_v36  ;;  %v1136_v2 = vrot.slane %v412_v35, 7  ;;  %v1040_v40 = vmul.f32 0.60025007, %v34_v44  ;;  %v1467_v42 = vmul.f32 0.19950019, %v2057_v20 }
  0x6a   :  { %v804_v22 = vadd.f32 %v731_v5, %v691_v50  ;;  %v1554_v59 = vadd.f32 %v1530_v47, %v1506_v51  ;;  %v692_v60 = vadd.f32 %v617_v63, %v547_v57  ;;  %v992_v37 = vrot.slane %v960_v56, 3 }
  0x6b   :  { %v1378_v1 = vsel %vm1372_vm4, %v220_v27, %v1136_v2  ;;  %v2140_v29 = vmul.f32 0.19950019, %v2114_v10  ;;  %v1072_v46 = vrot.slane %v1040_v40, 2  ;;  %v1507_v45 = vadd.f32 %v1467_v42, %v2070_v7 }
  0x6c   :  { %v933_v39 = vadd.f32 %v860_v58, %v804_v22  ;;  %v1582_v16 = vadd.f32 %v1554_v59, %v2067_v3  ;;  %v805_v8 = vadd.f32 %v730_v17, %v692_v60  ;;  %v1024_v44 = vadd.f32 %v992_v37, %v692_v60 }
  0x6d   :  { %v1104_v19 = vadd.f32 %v1072_v46, %v547_v57  ;;  %v1531_v20 = vmul.f32 0.20050019, %v2063_v6  ;;  %v61_v48 = vmul.f32 0.60025007, %v35_v0  ;;  %v77_v41 = vmul.f32 0.20024972, %v35_v0 }
  0x6e   :  { %v1211_v53 = vrot.slane %v933_v39, 6  ;;  %v1614_v54 = vadd.f32 %v1582_v16, %v2140_v29  ;;  %v934_v55 = vadd.f32 %v859_v36, %v805_v8  ;;  %v1297_v4 = vrot.slane %v1024_v44, 6 }
  0x6f   :  { %v1345_v11 = vrot.slane %v1104_v19, 6  ;;  %v1555_v24 = vadd.f32 %v1531_v20, %v1507_v45  ;;  %v109_v28 = vrot.slane %v77_v41, 1  ;;  %v157_v63 = vmul.f32 0.19950019, %v35_v0 }
  0x70   :  { %v2147_v7 = vsel %vm1195_vm5, %v1378_v1, %v1211_v53  ;;  %1639 = vst [vmem:[#allocation5 + $0x20] sm:$0xff] %v1614_v54  ;;  %v1212_v3 = vrot.slane %v934_v55, 6  ;;  %v237_v32 = vmul.f32 0.3997499, %v35_v0  ;;  %v253_v17 = vmul.f32 0.20050019, %v35_v0 }
  0x71   :  { %v2150_v6 = vmul.f32 0.19950019, %v2125_v18  ;;  %v1583_v15 = vadd.f32 %v1555_v24, %v2094_v34  ;;  %v141_v49 = vadd.f32 %v109_v28, %v61_v48  ;;  %v189_v36 = vrot.slane %v157_v63, 2 }
  0x72   :  { %v2155_v27 = vadd.f32 %v2131_v33, %v2102_v52  ;;  %v1213_v30 = vsel %vm1195_vm5, %v1211_v53, %v1212_v3  ;;  %v285_v31 = vrot.slane %v253_v17, 1  ;;  %v333_v21 = vrot.slane %v77_v41, 2 }
  0x73   :  { %v2159_v35 = vmul.f32 0.20024972, %v2147_v7  ;;  %v1410_v5 = vsel %vm600_vm1, %v1213_v30, %v1297_v4  ;;  %v1615_v47 = vadd.f32 %v1583_v15, %v2150_v6  ;;  %v381_v50 = vrot.slane %v157_v63, 3 }
  0x74   :  { %v2164_v34 = vsel %vm471_vm0, %v1410_v5, %v1345_v11  ;;  %v221_v51 = vadd.f32 %v189_v36, %v141_v49  ;;  %v317_v57 = vadd.f32 %v285_v31, %v237_v32  ;;  %v445_v56 = vmul.f32 0.20024972, %v36_v13 }
  0x75   :  { %1640 = vst [vmem:[#allocation5 + $0x28] sm:$0xff] %v1615_v47  ;;  %v429_v52 = vmul.f32 0.19950019, %v36_v13  ;;  %v574_v58 = vmul.f32 0.20050019, %v36_v13  ;;  %v619_v2 = vrot.slane %v253_v17, 2 }
  0x76   :  { %v732_v40 = vrot.slane %v77_v41, 3  ;;  %v365_v42 = vadd.f32 %v333_v21, %v317_v57  ;;  %v484_v22 = vrot.slane %v445_v56, 1  ;;  %v733_v59 = vrot.slane %v445_v56, 3  ;;  %v37_v17 = vld [vmem:[#allocation2 + $0x70] sm:$0xff] }
  0x77   :  { %v861_v60 = vrot.slane %v157_v63, 4  ;;  %v2167_v37 = vmul.f32 0.20024972, %v2164_v34  ;;  %v620_v0 = vrot.slane %v574_v58, 2  ;;  %v862_v1 = vrot.slane %v429_v52, 4 }
  0x78   :  { %v1468_v46 = vmul.f32 0.19950019, %v1996_v14  ;;  %v413_v45 = vadd.f32 %v381_v50, %v365_v42  ;;  %v485_v39 = vsel %vm471_vm0, %v109_v28, %v484_v22  ;;  %v734_v16 = vsel %vm713_vm2, %v732_v40, %v733_v59 }
  0x79   :  { %v2173_v8 = vmul.f32 0.19950019, %v2147_v7  ;;  %v548_v44 = vadd.f32 %v485_v39, %v157_v63  ;;  %v621_v19 = vsel %vm600_vm1, %v619_v2, %v620_v0  ;;  %v863_v20 = vsel %vm842_vm3, %v861_v60, %v862_v1  ;;  %v38_v2 = vld [vmem:[#allocation2 + $0x78] sm:$0xff] }
  0x7a   :  { %v1508_v48 = vadd.f32 %v1468_v46, %v2087_v43  ;;  %v1137_v41 = vrot.slane %v413_v45, 7  ;;  %v1532_v53 = vmul.f32 0.20050019, %v2037_v25  ;;  %v549_v54 = vadd.f32 %v484_v22, %v429_v52 }
  0x7b   :  { %v961_v14 = vmul.f32 0.3997499, %v36_v13  ;;  %v693_v55 = vadd.f32 %v621_v19, %v548_v44  ;;  %v1041_v4 = vmul.f32 0.60025007, %v36_v13  ;;  %v1469_v11 = vmul.f32 0.19950019, %v2060_v61 }
  0x7c   :  { %v2181_v24 = vmul.f32 0.19950019, %v2164_v34  ;;  %v1379_v28 = vsel %vm1372_vm4, %v221_v51, %v1137_v41  ;;  %v1556_v63 = vadd.f32 %v1532_v53, %v1508_v48  ;;  %v694_v3 = vadd.f32 %v620_v0, %v549_v54 }
  0x7d   :  { %v993_v32 = vrot.slane %v961_v14, 3  ;;  %v806_v15 = vadd.f32 %v734_v16, %v693_v55  ;;  %v1073_v43 = vrot.slane %v1041_v4, 2  ;;  %v1509_v49 = vadd.f32 %v1469_v11, %v2097_v23 }
  0x7e   :  { %v1533_v25 = vmul.f32 0.20050019, %v2073_v26  ;;  %v1584_v36 = vadd.f32 %v1556_v63, %v2117_v62  ;;  %v807_v13 = vadd.f32 %v733_v59, %v694_v3  ;;  %v62_v61 = vmul.f32 0.60025007, %v37_v17 }
  0x7f   :  { %v1025_v30 = vadd.f32 %v993_v32, %v694_v3  ;;  %v935_v31 = vadd.f32 %v863_v20, %v806_v15  ;;  %v1105_v21 = vadd.f32 %v1073_v43, %v549_v54  ;;  %v78_v47 = vmul.f32 0.20024972, %v37_v17 }
  0x80   :  { %v1557_v5 = vadd.f32 %v1533_v25, %v1509_v49  ;;  %v1616_v50 = vadd.f32 %v1584_v36, %v2173_v8  ;;  %v936_v51 = vadd.f32 %v862_v1, %v807_v13  ;;  %v158_v56 = vmul.f32 0.19950019, %v37_v17 }
  0x81   :  { %v1298_v57 = vrot.slane %v1025_v30, 6  ;;  %v1214_v52 = vrot.slane %v935_v31, 6  ;;  %v1346_v58 = vrot.slane %v1105_v21, 6  ;;  %v110_v26 = vrot.slane %v78_v47, 1 }
  0x82   :  { %v1585_v23 = vadd.f32 %v1557_v5, %v2131_v33  ;;  %1641 = vst [vmem:[#allocation5 + $0x30] sm:$0xff] %v1616_v50  ;;  %v1215_v62 = vrot.slane %v936_v51, 6  ;;  %v190_v40 = vrot.slane %v158_v56, 2  ;;  %v238_v42 = vmul.f32 0.3997499, %v37_v17 }
  0x83   :  { %v254_v22 = vmul.f32 0.20050019, %v37_v17  ;;  %v2191_v59 = vadd.f32 %v2159_v35, %v2140_v29  ;;  %v2194_v60 = vsel %vm1195_vm5, %v1379_v28, %v1214_v52  ;;  %v142_v1 = vadd.f32 %v110_v26, %v62_v61 }
  0x84   :  { %v1617_v0 = vadd.f32 %v1585_v23, %v2181_v24  ;;  %v2199_v33 = vadd.f32 %v2167_v37, %v2150_v6  ;;  %v1216_v46 = vsel %vm1195_vm5, %v1214_v52, %v1215_v62  ;;  %v334_v39 = vrot.slane %v78_v47, 2  ;;  %v39_v52 = vld [vmem:[#allocation2 + $0x80] sm:$0xff] }
  0x85   :  { %v286_v45 = vrot.slane %v254_v22, 1  ;;  %v2203_v16 = vmul.f32 0.20024972, %v2194_v60  ;;  %v1411_v29 = vsel %vm600_vm1, %v1216_v46, %v1298_v57  ;;  %v382_v44 = vrot.slane %v158_v56, 3 }
  0x86   :  { %1642 = vst [vmem:[#allocation5 + $0x38] sm:$0xff] %v1617_v0  ;;  %v446_v19 = vmul.f32 0.20024972, %v38_v2  ;;  %v2207_v20 = vsel %vm471_vm0, %v1411_v29, %v1346_v58  ;;  %v222_v48 = vadd.f32 %v190_v40, %v142_v1  ;;  %v575_v53 = vmul.f32 0.20050019, %v38_v2 }
  0x87   :  { %v318_v41 = vadd.f32 %v286_v45, %v238_v42  ;;  %v430_v6 = vmul.f32 0.19950019, %v38_v2  ;;  %v622_v14 = vrot.slane %v254_v22, 2  ;;  %v735_v55 = vrot.slane %v78_v47, 3 }
  0x88   :  { %v486_v54 = vrot.slane %v446_v19, 1  ;;  %v623_v11 = vrot.slane %v575_v53, 2  ;;  %v736_v28 = vrot.slane %v446_v19, 3  ;;  %v864_v63 = vrot.slane %v158_v56, 4  ;;  %v40_v53 = vld [vmem:[#allocation2 + $0x88] sm:$0xff] }
  0x89   :  { %v366_v4 = vadd.f32 %v334_v39, %v318_v41  ;;  %v2211_v3 = vadd.f32 %v2203_v16, %v2173_v8  ;;  %v2214_v32 = vmul.f32 0.20024972, %v2207_v20  ;;  %v865_v15 = vrot.slane %v430_v6, 4 }
  0x8a   :  { %v487_v17 = vsel %vm471_vm0, %v110_v26, %v486_v54  ;;  %v624_v25 = vsel %vm600_vm1, %v622_v14, %v623_v11  ;;  %v2219_v36 = vmul.f32 0.19950019, %v2194_v60  ;;  %v737_v13 = vsel %vm713_vm2, %v735_v55, %v736_v28 }
  0x8b   :  { %v414_v43 = vadd.f32 %v382_v44, %v366_v4  ;;  %v550_v49 = vadd.f32 %v487_v17, %v158_v56  ;;  %v1534_v30 = vmul.f32 0.20050019, %v2114_v10  ;;  %v551_v61 = vadd.f32 %v486_v54, %v430_v6 }
  0x8c   :  { %v962_v8 = vmul.f32 0.3997499, %v38_v2  ;;  %v866_v21 = vsel %vm842_vm3, %v864_v63, %v865_v15  ;;  %v1042_v47 = vmul.f32 0.60025007, %v38_v2  ;;  %v1535_v56 = vmul.f32 0.20050019, %v2125_v18 }
  0x8d   :  { %v695_v31 = vadd.f32 %v624_v25, %v550_v49  ;;  %v1138_v5 = vrot.slane %v414_v43, 7  ;;  %v1558_v50 = vadd.f32 %v1534_v30, %v2106_v12  ;;  %v696_v51 = vadd.f32 %v623_v11, %v551_v61 }
  0x8e   :  { %v994_v57 = vrot.slane %v962_v8, 3  ;;  %v1074_v26 = vrot.slane %v1042_v47, 2  ;;  %v1475_v10 = vmul.f32 0.19950019, %v2207_v20  ;;  %v1559_v22 = vadd.f32 %v1535_v56, %v2110_v38 }
  0x8f   :  { %v808_v58 = vadd.f32 %v737_v13, %v695_v31  ;;  %v1380_v23 = vsel %vm1372_vm4, %v222_v48, %v1138_v5  ;;  %v1586_v62 = vadd.f32 %v1558_v50, %v2159_v35  ;;  %v809_v40 = vadd.f32 %v736_v28, %v696_v51 }
  0x90   :  { %v1026_v42 = vadd.f32 %v994_v57, %v696_v51  ;;  %v1106_v0 = vadd.f32 %v1074_v26, %v551_v61  ;;  %v63_v12 = vmul.f32 0.60025007, %v39_v52  ;;  %v79_v1 = vmul.f32 0.20024972, %v39_v52 }
  0x91   :  { %v937_v2 = vadd.f32 %v866_v21, %v808_v58  ;;  %v1618_v46 = vadd.f32 %v1586_v62, %v2219_v36  ;;  %v938_v18 = vadd.f32 %v865_v15, %v809_v40  ;;  %v1587_v45 = vadd.f32 %v1559_v22, %v2167_v37 }
  0x92   :  { %v159_v39 = vmul.f32 0.19950019, %v39_v52  ;;  %v1299_v44 = vrot.slane %v1026_v42, 6  ;;  %v1347_v19 = vrot.slane %v1106_v0, 6  ;;  %v111_v48 = vrot.slane %v79_v1, 1 }
  0x93   :  { %v1217_v29 = vrot.slane %v937_v2, 6  ;;  %1643 = vst [vmem:[#allocation5 + $0x40] sm:$0xff] %v1618_v46  ;;  %v1218_v35 = vrot.slane %v938_v18, 6  ;;  %v1619_v41 = vadd.f32 %v1587_v45, %v1475_v10  ;;  %v239_v6 = vmul.f32 0.3997499, %v39_v52 }
  0x94   :  { %v255_v38 = vmul.f32 0.20050019, %v39_v52  ;;  %v2234_v54 = vadd.f32 %v2214_v32, %v2181_v24  ;;  %v143_v55 = vadd.f32 %v111_v48, %v63_v12  ;;  %v191_v37 = vrot.slane %v159_v39, 2 }
  0x95   :  { %v2237_v14 = vsel %vm1195_vm5, %v1380_v23, %v1217_v29  ;;  %v1219_v4 = vsel %vm1195_vm5, %v1217_v29, %v1218_v35  ;;  %1644 = vst [vmem:[#allocation5 + $0x48] sm:$0xff] %v1619_v41  ;;  %v335_v28 = vrot.slane %v79_v1, 2  ;;  %v383_v63 = vrot.slane %v159_v39, 3 }
  0x96   :  { %v287_v11 = vrot.slane %v255_v38, 1  ;;  %v2241_v17 = vmul.f32 0.20024972, %v2237_v14  ;;  %v1412_v15 = vsel %vm600_vm1, %v1219_v4, %v1299_v44  ;;  %v447_v43 = vmul.f32 0.20024972, %v40_v53  ;;  %v41_v44 = vld [vmem:[#allocation2 + $0x90] sm:$0xff] }
  0x97   :  { %v576_v49 = vmul.f32 0.20050019, %v40_v53  ;;  %v2245_v24 = vsel %vm471_vm0, %v1412_v15, %v1347_v19  ;;  %v431_v13 = vmul.f32 0.19950019, %v40_v53  ;;  %v625_v30 = vrot.slane %v255_v38, 2 }
  0x98   :  { %v319_v25 = vadd.f32 %v287_v11, %v239_v6  ;;  %v2248_v61 = vmul.f32 0.20024972, %v2245_v24  ;;  %v488_v8 = vrot.slane %v447_v43, 1  ;;  %v738_v21 = vrot.slane %v79_v1, 3 }
  0x99   :  { %v626_v31 = vrot.slane %v576_v49, 2  ;;  %v739_v47 = vrot.slane %v447_v43, 3  ;;  %v867_v50 = vrot.slane %v159_v39, 4  ;;  %v868_v51 = vrot.slane %v431_v13, 4 }
  0x9a   :  { %v367_v5 = vadd.f32 %v335_v28, %v319_v25  ;;  %v2252_v57 = vadd.f32 %v2241_v17, %v2219_v36  ;;  %v223_v56 = vadd.f32 %v191_v37, %v143_v55  ;;  %v489_v52 = vsel %vm471_vm0, %v111_v48, %v488_v8 }
  0x9b   :  { %v627_v58 = vsel %vm600_vm1, %v625_v30, %v626_v31  ;;  %v2257_v23 = vadd.f32 %v2248_v61, %v1475_v10  ;;  %v552_v62 = vadd.f32 %v489_v52, %v159_v39  ;;  %v740_v40 = vsel %vm713_vm2, %v738_v21, %v739_v47 }
  0x9c   :  { %v415_v26 = vadd.f32 %v383_v63, %v367_v5  ;;  %v1536_v42 = vmul.f32 0.20050019, %v2147_v7  ;;  %v553_v22 = vadd.f32 %v488_v8, %v431_v13  ;;  %v963_v2 = vmul.f32 0.3997499, %v40_v53 }
  0x9d   :  { %v1043_v0 = vmul.f32 0.60025007, %v40_v53  ;;  %v697_v12 = vadd.f32 %v627_v58, %v552_v62  ;;  %v869_v36 = vsel %vm842_vm3, %v867_v50, %v868_v51  ;;  %v1537_v46 = vmul.f32 0.20050019, %v2164_v34 }
  0x9e   :  { %v1139_v1 = vrot.slane %v415_v26, 7  ;;  %v1560_v18 = vadd.f32 %v1536_v42, %v2122_v9  ;;  %v698_v45 = vadd.f32 %v626_v31, %v553_v22  ;;  %v995_v10 = vrot.slane %v963_v2, 3 }
  0x9f   :  { %v1075_v29 = vrot.slane %v1043_v0, 2  ;;  %v810_v39 = vadd.f32 %v740_v40, %v697_v12  ;;  %v1476_v19 = vmul.f32 0.19950019, %v2237_v14  ;;  %v2266_v7 = vmul.f32 0.19950019, %v2245_v24 }
  0xa0   :  { %v1561_v48 = vadd.f32 %v1537_v46, %v2155_v27  ;;  %v1588_v35 = vadd.f32 %v1560_v18, %v2203_v16  ;;  %v811_v41 = vadd.f32 %v739_v47, %v698_v45  ;;  %v1027_v53 = vadd.f32 %v995_v10, %v698_v45  ;;  %v42_v27 = vld [vmem:[#allocation2 + $0x98] sm:$0xff] }
  0xa1   :  { %v1107_v6 = vadd.f32 %v1075_v29, %v553_v22  ;;  %v939_v34 = vadd.f32 %v869_v36, %v810_v39  ;;  %v64_v38 = vmul.f32 0.60025007, %v41_v44  ;;  %v80_v55 = vmul.f32 0.20024972, %v41_v44 }
  0xa2   :  { %v1589_v9 = vadd.f32 %v1561_v48, %v2214_v32  ;;  %v1381_v37 = vsel %vm1372_vm4, %v223_v56, %v1139_v1  ;;  %v1620_v4 = vadd.f32 %v1588_v35, %v1476_v19  ;;  %v940_v11 = vadd.f32 %v868_v51, %v811_v41 }
  0xa3   :  { %v160_v28 = vmul.f32 0.19950019, %v41_v44  ;;  %v1220_v63 = vrot.slane %v939_v34, 6  ;;  %v1300_v15 = vrot.slane %v1027_v53, 6  ;;  %v112_v49 = vrot.slane %v80_v55, 1 }
  0xa4   :  { %v1621_v43 = vadd.f32 %v1589_v9, %v2266_v7  ;;  %1645 = vst [vmem:[#allocation5 + $0x50] sm:$0xff] %v1620_v4  ;;  %v1221_v16 = vrot.slane %v940_v11, 6  ;;  %v1348_v25 = vrot.slane %v1107_v6, 6  ;;  %v240_v13 = vmul.f32 0.3997499, %v41_v44 }
  0xa5   :  { %v256_v30 = vmul.f32 0.20050019, %v41_v44  ;;  %v2274_v32 = vsel %vm1195_vm5, %v1381_v37, %v1220_v63  ;;  %v144_v8 = vadd.f32 %v112_v49, %v64_v38  ;;  %v192_v31 = vrot.slane %v160_v28, 2 }
  0xa6   :  { %1646 = vst [vmem:[#allocation5 + $0x58] sm:$0xff] %v1621_v43  ;;  %v336_v21 = vrot.slane %v80_v55, 2  ;;  %v1222_v5 = vsel %vm1195_vm5, %v1220_v63, %v1221_v16  ;;  %v384_v50 = vrot.slane %v160_v28, 3  ;;  %v448_v51 = vmul.f32 0.20024972, %v42_v27  ;;  %v43_v43 = vld [vmem:[#allocation2 + $0xa0] sm:$0xff] }
  0xa7   :  { %v288_v47 = vrot.slane %v256_v30, 1  ;;  %v2278_v56 = vmul.f32 0.20024972, %v2274_v32  ;;  %v1413_v52 = vsel %vm600_vm1, %v1222_v5, %v1300_v15  ;;  %v577_v58 = vmul.f32 0.20050019, %v42_v27 }
  0xa8   :  { %v628_v26 = vrot.slane %v256_v30, 2  ;;  %v2282_v62 = vsel %vm471_vm0, %v1413_v52, %v1348_v25  ;;  %v432_v42 = vmul.f32 0.19950019, %v42_v27  ;;  %v490_v22 = vrot.slane %v448_v51, 1 }
  0xa9   :  { %v320_v40 = vadd.f32 %v288_v47, %v240_v13  ;;  %v224_v2 = vadd.f32 %v192_v31, %v144_v8  ;;  %v629_v0 = vrot.slane %v577_v58, 2  ;;  %v741_v12 = vrot.slane %v80_v55, 3  ;;  %v44_v58 = vld [vmem:[#allocation2 + $0xa8] sm:$0xff] }
  0xaa   :  { %v742_v36 = vrot.slane %v448_v51, 3  ;;  %v491_v46 = vsel %vm471_vm0, %v112_v49, %v490_v22  ;;  %v870_v18 = vrot.slane %v160_v28, 4  ;;  %v871_v45 = vrot.slane %v432_v42, 4 }
  0xab   :  { %v368_v1 = vadd.f32 %v336_v21, %v320_v40  ;;  %v2286_v10 = vadd.f32 %v2278_v56, %v1476_v19  ;;  %v2289_v29 = vmul.f32 0.20024972, %v2282_v62  ;;  %v554_v44 = vadd.f32 %v491_v46, %v160_v28 }
  0xac   :  { %v630_v39 = vsel %vm600_vm1, %v628_v26, %v629_v0  ;;  %v743_v35 = vsel %vm713_vm2, %v741_v12, %v742_v36  ;;  %v872_v41 = vsel %vm842_vm3, %v870_v18, %v871_v45  ;;  %v1538_v53 = vmul.f32 0.20050019, %v2194_v60 }
  0xad   :  { %v416_v48 = vadd.f32 %v384_v50, %v368_v1  ;;  %v699_v6 = vadd.f32 %v630_v39, %v554_v44  ;;  %v555_v34 = vadd.f32 %v490_v22, %v432_v42  ;;  %v964_v9 = vmul.f32 0.3997499, %v42_v27 }
  0xae   :  { %v1044_v38 = vmul.f32 0.60025007, %v42_v27  ;;  %v2296_v19 = vmul.f32 0.19950019, %v2274_v32  ;;  %v1562_v37 = vadd.f32 %v1538_v53, %v2191_v59  ;;  %v1539_v4 = vmul.f32 0.20050019, %v2207_v20 }
  0xaf   :  { %v1140_v55 = vrot.slane %v416_v48, 7  ;;  %v812_v11 = vadd.f32 %v743_v35, %v699_v6  ;;  %v700_v28 = vadd.f32 %v629_v0, %v555_v34  ;;  %v996_v63 = vrot.slane %v964_v9, 3 }
  0xb0   :  { %v1076_v15 = vrot.slane %v1044_v38, 2  ;;  %v1590_v60 = vadd.f32 %v1562_v37, %v2241_v17  ;;  %v2303_v16 = vmul.f32 0.19950019, %v2282_v62  ;;  %v1563_v27 = vadd.f32 %v1539_v4, %v2199_v33 }
  0xb1   :  { %v1382_v49 = vsel %vm1372_vm4, %v224_v2, %v1140_v55  ;;  %v941_v25 = vadd.f32 %v872_v41, %v812_v11  ;;  %v813_v13 = vadd.f32 %v742_v36, %v700_v28  ;;  %v1028_v30 = vadd.f32 %v996_v63, %v700_v28 }
  0xb2   :  { %v1108_v59 = vadd.f32 %v1076_v15, %v555_v34  ;;  %v1622_v20 = vadd.f32 %v1590_v60, %v2296_v19  ;;  %v1591_v8 = vadd.f32 %v1563_v27, %v2248_v61  ;;  %v65_v31 = vmul.f32 0.60025007, %v43_v43 }
  0xb3   :  { %v81_v21 = vmul.f32 0.20024972, %v43_v43  ;;  %v2310_v5 = vadd.f32 %v2289_v29, %v2266_v7  ;;  %v1223_v17 = vrot.slane %v941_v25, 6  ;;  %v942_v47 = vadd.f32 %v871_v45, %v813_v13 }
  0xb4   :  { %v161_v50 = vmul.f32 0.19950019, %v43_v43  ;;  %1647 = vst [vmem:[#allocation5 + $0x60] sm:$0xff] %v1622_v20  ;;  %v1301_v51 = vrot.slane %v1028_v30, 6  ;;  %v1349_v33 = vrot.slane %v1108_v59, 6  ;;  %v1623_v52 = vadd.f32 %v1591_v8, %v2303_v16 }
  0xb5   :  { %v113_v26 = vrot.slane %v81_v21, 1  ;;  %v2314_v40 = vsel %vm1195_vm5, %v1382_v49, %v1223_v17  ;;  %v1224_v61 = vrot.slane %v942_v47, 6  ;;  %v241_v42 = vmul.f32 0.3997499, %v43_v43 }
  0xb6   :  { %v257_v22 = vmul.f32 0.20050019, %v43_v43  ;;  %v2317_v2 = vmul.f32 0.20024972, %v2314_v40  ;;  %1648 = vst [vmem:[#allocation5 + $0x68] sm:$0xff] %v1623_v52  ;;  %v193_v0 = vrot.slane %v161_v50, 2 }
  0xb7   :  { %v145_v7 = vadd.f32 %v113_v26, %v65_v31  ;;  %v337_v12 = vrot.slane %v81_v21, 2  ;;  %v1225_v36 = vsel %vm1195_vm5, %v1223_v17, %v1224_v61  ;;  %v449_v46 = vmul.f32 0.20024972, %v44_v58 }
  0xb8   :  { %v289_v1 = vrot.slane %v257_v22, 1  ;;  %v578_v18 = vmul.f32 0.20050019, %v44_v58  ;;  %v1414_v45 = vsel %vm600_vm1, %v1225_v36, %v1301_v51  ;;  %v385_v44 = vrot.slane %v161_v50, 3 }
  0xb9   :  { %v433_v39 = vmul.f32 0.19950019, %v44_v58  ;;  %v631_v48 = vrot.slane %v257_v22, 2  ;;  %v2322_v35 = vsel %vm471_vm0, %v1414_v45, %v1349_v33  ;;  %v492_v53 = vrot.slane %v449_v46, 1 }
  0xba   :  { %v321_v41 = vadd.f32 %v289_v1, %v241_v42  ;;  %v632_v6 = vrot.slane %v578_v18, 2  ;;  %v225_v34 = vadd.f32 %v193_v0, %v145_v7  ;;  %v744_v9 = vrot.slane %v81_v21, 3 }
  0xbb   :  { %v745_v38 = vrot.slane %v449_v46, 3  ;;  %v873_v55 = vrot.slane %v161_v50, 4  ;;  %v493_v4 = vsel %vm471_vm0, %v113_v26, %v492_v53  ;;  %v874_v28 = vrot.slane %v433_v39, 4 }
  0xbc   :  { %v369_v37 = vadd.f32 %v337_v12, %v321_v41  ;;  %v633_v11 = vsel %vm600_vm1, %v631_v48, %v632_v6  ;;  %v2327_v63 = vmul.f32 0.20024972, %v2322_v35  ;;  %v556_v15 = vadd.f32 %v493_v4, %v161_v50  ;;  %v45_v50 = vld [vmem:[#allocation2 + $0xb0] sm:$0xff]  ;;  %v46_v48 = vld [vmem:[#allocation2 + $0xb8] sm:$0xff] }
  0xbd   :  { %v746_v43 = vsel %vm713_vm2, %v744_v9, %v745_v38  ;;  %v2331_v49 = vmul.f32 0.19950019, %v2314_v40  ;;  %v875_v27 = vsel %vm842_vm3, %v873_v55, %v874_v28  ;;  %v1540_v25 = vmul.f32 0.20050019, %v2237_v14 }
  0xbe   :  { %v417_v60 = vadd.f32 %v385_v44, %v369_v37  ;;  %v557_v13 = vadd.f32 %v492_v53, %v433_v39  ;;  %v701_v30 = vadd.f32 %v633_v11, %v556_v15  ;;  %v965_v59 = vmul.f32 0.3997499, %v44_v58 }
  0xbf   :  { %v1045_v20 = vmul.f32 0.60025007, %v44_v58  ;;  %v2336_v8 = vmul.f32 0.19950019, %v2322_v35  ;;  %v1564_v21 = vadd.f32 %v1540_v25, %v2211_v3  ;;  %v1541_v47 = vmul.f32 0.20050019, %v2245_v24 }
  0xc0   :  { %v1141_v31 = vrot.slane %v417_v60, 7  ;;  %v702_v17 = vadd.f32 %v632_v6, %v557_v13  ;;  %v814_v51 = vadd.f32 %v746_v43, %v701_v30  ;;  %v997_v33 = vrot.slane %v965_v59, 3 }
  0xc1   :  { %v1077_v52 = vrot.slane %v1045_v20, 2  ;;  %v66_v26 = vmul.f32 0.60025007, %v45_v50  ;;  %v1592_v61 = vadd.f32 %v1564_v21, %v2278_v56  ;;  %v1565_v58 = vadd.f32 %v1541_v47, %v2234_v54 }
  0xc2   :  { %v1383_v14 = vsel %vm1372_vm4, %v225_v34, %v1141_v31  ;;  %v815_v42 = vadd.f32 %v745_v38, %v702_v17  ;;  %v943_v22 = vadd.f32 %v875_v27, %v814_v51  ;;  %v1029_v7 = vadd.f32 %v997_v33, %v702_v17 }
  0xc3   :  { %v1109_v0 = vadd.f32 %v1077_v52, %v557_v13  ;;  %v82_v12 = vmul.f32 0.20024972, %v45_v50  ;;  %v1624_v3 = vadd.f32 %v1592_v61, %v2331_v49  ;;  %v1593_v24 = vadd.f32 %v1565_v58, %v2289_v29 }
  0xc4   :  { %v944_v36 = vadd.f32 %v874_v28, %v815_v42  ;;  %v162_v1 = vmul.f32 0.19950019, %v45_v50  ;;  %v2347_v46 = vadd.f32 %v2317_v2, %v2296_v19  ;;  %v1226_v18 = vrot.slane %v943_v22, 6 }
  0xc5   :  { %v1302_v45 = vrot.slane %v1029_v7, 6  ;;  %v114_v56 = vrot.slane %v82_v12, 1  ;;  %1649 = vst [vmem:[#allocation5 + $0x70] sm:$0xff] %v1624_v3  ;;  %v1350_v54 = vrot.slane %v1109_v0, 6  ;;  %v1625_v39 = vadd.f32 %v1593_v24, %v2336_v8 }
  0xc6   :  { %v1227_v44 = vrot.slane %v944_v36, 6  ;;  %v194_v41 = vrot.slane %v162_v1, 2  ;;  %v2351_v53 = vsel %vm1195_vm5, %v1383_v14, %v1226_v18  ;;  %v242_v29 = vmul.f32 0.3997499, %v45_v50 }
  0xc7   :  { %v146_v6 = vadd.f32 %v114_v56, %v66_v26  ;;  %v258_v34 = vmul.f32 0.20050019, %v45_v50  ;;  %v2355_v19 = vadd.f32 %v2327_v63, %v2303_v16  ;;  %v2358_v9 = vmul.f32 0.20024972, %v2351_v53  ;;  %1650 = vst [vmem:[#allocation5 + $0x78] sm:$0xff] %v1625_v39 }
  0xc8   :  { %v1228_v38 = vsel %vm1195_vm5, %v1226_v18, %v1227_v44  ;;  %v338_v55 = vrot.slane %v82_v12, 2  ;;  %v386_v11 = vrot.slane %v162_v1, 3  ;;  %v450_v28 = vmul.f32 0.20024972, %v46_v48  ;;  %v47_v18 = vld [vmem:[#allocation2 + $0xc0] sm:$0xff] }
  0xc9   :  { %v1415_v37 = vsel %vm600_vm1, %v1228_v38, %v1302_v45  ;;  %v290_v4 = vrot.slane %v258_v34, 1  ;;  %v434_v43 = vmul.f32 0.19950019, %v46_v48  ;;  %v579_v60 = vmul.f32 0.20050019, %v46_v48 }
  0xca   :  { %v2363_v15 = vsel %vm471_vm0, %v1415_v37, %v1350_v54  ;;  %v634_v27 = vrot.slane %v258_v34, 2  ;;  %v226_v16 = vadd.f32 %v194_v41, %v146_v6  ;;  %v494_v13 = vrot.slane %v450_v28, 1 }
  0xcb   :  { %v322_v25 = vadd.f32 %v290_v4, %v242_v29  ;;  %v747_v30 = vrot.slane %v82_v12, 3  ;;  %v635_v59 = vrot.slane %v579_v60, 2  ;;  %v748_v20 = vrot.slane %v450_v28, 3 }
  0xcc   :  { %v876_v31 = vrot.slane %v162_v1, 4  ;;  %v877_v21 = vrot.slane %v434_v43, 4  ;;  %v2367_v17 = vadd.f32 %v2358_v9, %v2331_v49  ;;  %v2370_v47 = vmul.f32 0.20024972, %v2363_v15 }
  0xcd   :  { %v370_v50 = vadd.f32 %v338_v55, %v322_v25  ;;  %v495_v51 = vsel %vm471_vm0, %v114_v56, %v494_v13  ;;  %v636_v52 = vsel %vm600_vm1, %v634_v27, %v635_v59  ;;  %v749_v26 = vsel %vm713_vm2, %v747_v30, %v748_v20 }
  0xce   :  { %v558_v33 = vadd.f32 %v495_v51, %v162_v1  ;;  %v2376_v14 = vmul.f32 0.19950019, %v2351_v53  ;;  %v1542_v42 = vmul.f32 0.20050019, %v2274_v32  ;;  %v559_v58 = vadd.f32 %v494_v13, %v434_v43 }
  0xcf   :  { %v418_v61 = vadd.f32 %v386_v11, %v370_v50  ;;  %v966_v49 = vmul.f32 0.3997499, %v46_v48  ;;  %v878_v7 = vsel %vm842_vm3, %v876_v31, %v877_v21  ;;  %v1046_v0 = vmul.f32 0.60025007, %v46_v48 }
  0xd0   :  { %v703_v22 = vadd.f32 %v636_v52, %v558_v33  ;;  %v1543_v12 = vmul.f32 0.20050019, %v2282_v62  ;;  %v1566_v36 = vadd.f32 %v1542_v42, %v2252_v57  ;;  %v704_v24 = vadd.f32 %v635_v59, %v559_v58 }
  0xd1   :  { %v1142_v3 = vrot.slane %v418_v61, 7  ;;  %v998_v1 = vrot.slane %v966_v49, 3  ;;  %v1078_v56 = vrot.slane %v1046_v0, 2  ;;  %v2383_v44 = vmul.f32 0.19950019, %v2363_v15 }
  0xd2   :  { %v816_v45 = vadd.f32 %v749_v26, %v703_v22  ;;  %v1567_v32 = vadd.f32 %v1543_v12, %v2257_v23  ;;  %v1594_v54 = vadd.f32 %v1566_v36, %v2317_v2  ;;  %v817_v39 = vadd.f32 %v748_v20, %v704_v24  ;;  %v48_v23 = vld [vmem:[#allocation2 + $0xc8] sm:$0xff] }
  0xd3   :  { %v1030_v41 = vadd.f32 %v998_v1, %v704_v24  ;;  %v67_v48 = vmul.f32 0.60025007, %v47_v18  ;;  %v1110_v62 = vadd.f32 %v1078_v56, %v559_v58  ;;  %v83_v57 = vmul.f32 0.20024972, %v47_v18 }
  0xd4   :  { %v945_v6 = vadd.f32 %v878_v7, %v816_v45  ;;  %v1595_v29 = vadd.f32 %v1567_v32, %v2327_v63  ;;  %v1384_v34 = vsel %vm1372_vm4, %v226_v16, %v1142_v3  ;;  %v1626_v38 = vadd.f32 %v1594_v54, %v2376_v14 }
  0xd5   :  { %v946_v55 = vadd.f32 %v877_v21, %v817_v39  ;;  %v1303_v37 = vrot.slane %v1030_v41, 6  ;;  %v115_v28 = vrot.slane %v83_v57, 1  ;;  %v163_v2 = vmul.f32 0.19950019, %v47_v18 }
  0xd6   :  { %v1229_v4 = vrot.slane %v945_v6, 6  ;;  %v1627_v11 = vadd.f32 %v1595_v29, %v2383_v44  ;;  %1651 = vst [vmem:[#allocation5 + $0x80] sm:$0xff] %v1626_v38  ;;  %v1351_v60 = vrot.slane %v1110_v62, 6  ;;  %v243_v27 = vmul.f32 0.3997499, %v47_v18 }
  0xd7   :  { %v1230_v43 = vrot.slane %v946_v55, 6  ;;  %v259_v25 = vmul.f32 0.20050019, %v47_v18  ;;  %v2393_v63 = vadd.f32 %v2370_v47, %v2336_v8  ;;  %v147_v13 = vadd.f32 %v115_v28, %v67_v48 }
  0xd8   :  { %v2396_v16 = vsel %vm1195_vm5, %v1384_v34, %v1229_v4  ;;  %1652 = vst [vmem:[#allocation5 + $0x88] sm:$0xff] %v1627_v11  ;;  %v195_v30 = vrot.slane %v163_v2, 2  ;;  %v339_v31 = vrot.slane %v83_v57, 2  ;;  %v387_v21 = vrot.slane %v163_v2, 3 }
  0xd9   :  { %v1231_v59 = vsel %vm1195_vm5, %v1229_v4, %v1230_v43  ;;  %v291_v20 = vrot.slane %v259_v25, 1  ;;  %v1502_v50 = vmul.f32 0.20024972, %v2396_v16  ;;  %v451_v33 = vmul.f32 0.20024972, %v48_v23 }
  0xda   :  { %v1416_v51 = vsel %vm600_vm1, %v1231_v59, %v1303_v37  ;;  %v580_v52 = vmul.f32 0.20050019, %v48_v23  ;;  %v435_v61 = vmul.f32 0.19950019, %v48_v23  ;;  %v637_v42 = vrot.slane %v259_v25, 2 }
  0xdb   :  { %v2402_v8 = vsel %vm471_vm0, %v1416_v51, %v1351_v60  ;;  %v323_v26 = vadd.f32 %v291_v20, %v243_v27  ;;  %v227_v58 = vadd.f32 %v195_v30, %v147_v13  ;;  %v496_v49 = vrot.slane %v451_v33, 1  ;;  %v49_v30 = vld [vmem:[#allocation2 + $0xd0] sm:$0xff] }
  0xdc   :  { %v638_v22 = vrot.slane %v580_v52, 2  ;;  %v750_v7 = vrot.slane %v83_v57, 3  ;;  %v751_v12 = vrot.slane %v451_v33, 3  ;;  %v879_v3 = vrot.slane %v163_v2, 4 }
  0xdd   :  { %v371_v0 = vadd.f32 %v339_v31, %v323_v26  ;;  %v880_v36 = vrot.slane %v435_v61, 4  ;;  %v2405_v24 = vadd.f32 %v1502_v50, %v2376_v14  ;;  %v1503_v1 = vmul.f32 0.20024972, %v2402_v8 }
  0xde   :  { %v497_v18 = vsel %vm471_vm0, %v115_v28, %v496_v49  ;;  %v639_v45 = vsel %vm600_vm1, %v637_v42, %v638_v22  ;;  %v752_v54 = vsel %vm713_vm2, %v750_v7, %v751_v12  ;;  %v1484_v39 = vmul.f32 0.19950019, %v2396_v16  ;;  %v50_v7 = vld [vmem:[#allocation2 + $0xd8] sm:$0xff] }
  0xdf   :  { %v419_v56 = vadd.f32 %v387_v21, %v371_v0  ;;  %v560_v32 = vadd.f32 %v497_v18, %v163_v2  ;;  %v1544_v41 = vmul.f32 0.20050019, %v2314_v40  ;;  %v561_v48 = vadd.f32 %v496_v49, %v435_v61 }
  0xe0   :  { %v967_v6 = vmul.f32 0.3997499, %v48_v23  ;;  %v1047_v62 = vmul.f32 0.60025007, %v48_v23  ;;  %v881_v14 = vsel %vm842_vm3, %v879_v3, %v880_v36  ;;  %v1545_v34 = vmul.f32 0.20050019, %v2322_v35 }
  0xe1   :  { %v705_v29 = vadd.f32 %v639_v45, %v560_v32  ;;  %v1143_v57 = vrot.slane %v419_v56, 7  ;;  %v1568_v38 = vadd.f32 %v1544_v41, %v2286_v10  ;;  %v706_v55 = vadd.f32 %v638_v22, %v561_v48 }
  0xe2   :  { %v999_v37 = vrot.slane %v967_v6, 3  ;;  %v1079_v4 = vrot.slane %v1047_v62, 2  ;;  %v2417_v28 = vmul.f32 0.19950019, %v2402_v8  ;;  %v1569_v40 = vadd.f32 %v1545_v34, %v2310_v5 }
  0xe3   :  { %v818_v11 = vadd.f32 %v752_v54, %v705_v29  ;;  %v1546_v2 = vmul.f32 0.20050019, %v2351_v53  ;;  %v1596_v23 = vadd.f32 %v1568_v38, %v2358_v9  ;;  %v819_v43 = vadd.f32 %v751_v12, %v706_v55 }
  0xe4   :  { %v1031_v60 = vadd.f32 %v999_v37, %v706_v55  ;;  %v1111_v27 = vadd.f32 %v1079_v4, %v561_v48  ;;  %v1597_v35 = vadd.f32 %v1569_v40, %v2370_v47  ;;  %v1547_v13 = vmul.f32 0.20050019, %v2363_v15 }
  0xe5   :  { %v947_v25 = vadd.f32 %v881_v14, %v818_v11  ;;  %v1570_v10 = vadd.f32 %v1546_v2, %v2347_v46  ;;  %v1385_v59 = vsel %vm1372_vm4, %v227_v58, %v1143_v57  ;;  %v1628_v20 = vadd.f32 %v1596_v23, %v1484_v39 }
  0xe6   :  { %v948_v31 = vadd.f32 %v880_v36, %v819_v43  ;;  %v1304_v5 = vrot.slane %v1031_v60, 6  ;;  %v1352_v53 = vrot.slane %v1111_v27, 6  ;;  %v1629_v9 = vadd.f32 %v1597_v35, %v2417_v28 }
  0xe7   :  { %v1232_v21 = vrot.slane %v947_v25, 6  ;;  %v1571_v51 = vadd.f32 %v1547_v13, %v2355_v19  ;;  %1653 = vst [vmem:[#allocation5 + $0x90] sm:$0xff] %v1628_v20  ;;  %v1598_v52 = vadd.f32 %v1570_v10, %v1502_v50  ;;  %v68_v47 = vmul.f32 0.60025007, %v49_v30 }
  0xe8   :  { %v1233_v33 = vrot.slane %v948_v31, 6  ;;  %v84_v26 = vmul.f32 0.20024972, %v49_v30  ;;  %v2429_v46 = vadd.f32 %v1503_v1, %v2383_v44  ;;  %1654 = vst [vmem:[#allocation5 + $0x98] sm:$0xff] %v1629_v9  ;;  %v164_v42 = vmul.f32 0.19950019, %v49_v30 }
  0xe9   :  { %v2432_v15 = vsel %vm1195_vm5, %v1385_v59, %v1232_v21  ;;  %v1599_v61 = vadd.f32 %v1571_v51, %v1503_v1  ;;  %v244_v44 = vmul.f32 0.3997499, %v49_v30  ;;  %v260_v12 = vmul.f32 0.20050019, %v49_v30  ;;  %v51_v30 = vld [vmem:[#allocation2 + $0xe0] sm:$0xff] }
  0xea   :  { %v1504_v58 = vmul.f32 0.20024972, %v2432_v15  ;;  %v1234_v49 = vsel %vm1195_vm5, %v1232_v21, %v1233_v33  ;;  %v2437_v19 = vmul.f32 0.19950019, %v2432_v15  ;;  %v116_v22 = vrot.slane %v84_v26, 1 }
  0xeb   :  { %v1417_v50 = vsel %vm600_vm1, %v1234_v49, %v1304_v5  ;;  %v196_v0 = vrot.slane %v164_v42, 2  ;;  %v340_v18 = vrot.slane %v84_v26, 2  ;;  %v292_v32 = vrot.slane %v260_v12, 1 }
  0xec   :  { %v2441_v3 = vsel %vm471_vm0, %v1417_v50, %v1352_v53  ;;  %v1630_v36 = vadd.f32 %v2437_v19, %v1598_v52  ;;  %v148_v1 = vadd.f32 %v116_v22, %v68_v47  ;;  %v388_v54 = vrot.slane %v164_v42, 3 }
  0xed   :  { %v2445_v45 = vmul.f32 0.20024972, %v2441_v3  ;;  %v2448_v56 = vmul.f32 0.19950019, %v2441_v3  ;;  %v2450_v41 = vadd.f32 %v1504_v58, %v1484_v39  ;;  %v436_v48 = vmul.f32 0.19950019, %v50_v7 }
  0xee   :  { %1655 = vst [vmem:[#allocation5 + $0xa0] sm:$0xff] %v1630_v36  ;;  %v452_v6 = vmul.f32 0.20024972, %v50_v7  ;;  %v581_v62 = vmul.f32 0.20050019, %v50_v7  ;;  %v228_v14 = vadd.f32 %v196_v0, %v148_v1  ;;  %v324_v57 = vadd.f32 %v292_v32, %v244_v44  ;;  %v52_v0 = vld [vmem:[#allocation2 + $0xe8] sm:$0xff] }
  0xef   :  { %v1631_v29 = vadd.f32 %v2448_v56, %v1599_v61  ;;  %v640_v34 = vrot.slane %v260_v12, 2  ;;  %v753_v37 = vrot.slane %v84_v26, 3  ;;  %v882_v40 = vrot.slane %v164_v42, 4 }
  0xf0   :  { %v498_v38 = vrot.slane %v452_v6, 1  ;;  %v641_v55 = vrot.slane %v581_v62, 2  ;;  %v754_v4 = vrot.slane %v452_v6, 3  ;;  %v372_v11 = vadd.f32 %v340_v18, %v324_v57 }
  0xf1   :  { %1656 = vst [vmem:[#allocation5 + $0xa8] sm:$0xff] %v1631_v29  ;;  %v883_v2 = vrot.slane %v436_v48, 4  ;;  %v1548_v39 = vmul.f32 0.20050019, %v2396_v16  ;;  %v968_v20 = vmul.f32 0.3997499, %v50_v7 }
  0xf2   :  { %v499_v23 = vsel %vm471_vm0, %v116_v22, %v498_v38  ;;  %v642_v43 = vsel %vm600_vm1, %v640_v34, %v641_v55  ;;  %v755_v60 = vsel %vm713_vm2, %v753_v37, %v754_v4  ;;  %v563_v27 = vadd.f32 %v498_v38, %v436_v48 }
  0xf3   :  { %v420_v25 = vadd.f32 %v388_v54, %v372_v11  ;;  %v562_v35 = vadd.f32 %v499_v23, %v164_v42  ;;  %v884_v10 = vsel %vm842_vm3, %v882_v40, %v883_v2  ;;  %v1572_v13 = vadd.f32 %v1548_v39, %v2367_v17 }
  0xf4   :  { %v708_v59 = vadd.f32 %v641_v55, %v563_v27  ;;  %v1048_v31 = vmul.f32 0.60025007, %v50_v7  ;;  %v1549_v5 = vmul.f32 0.20050019, %v2402_v8  ;;  %v69_v9 = vmul.f32 0.60025007, %v51_v30 }
  0xf5   :  { %v707_v16 = vadd.f32 %v642_v43, %v562_v35  ;;  %v1144_v21 = vrot.slane %v420_v25, 7  ;;  %v1600_v53 = vadd.f32 %v1572_v13, %v1504_v58  ;;  %v1000_v33 = vrot.slane %v968_v20, 3 }
  0xf6   :  { %v821_v51 = vadd.f32 %v754_v4, %v708_v59  ;;  %v1080_v52 = vrot.slane %v1048_v31, 2  ;;  %v1573_v47 = vadd.f32 %v1549_v5, %v2393_v63  ;;  %v85_v42 = vmul.f32 0.20024972, %v51_v30 }
  0xf7   :  { %v820_v26 = vadd.f32 %v755_v60, %v707_v16  ;;  %v1386_v61 = vsel %vm1372_vm4, %v228_v14, %v1144_v21  ;;  %v165_v17 = vmul.f32 0.19950019, %v51_v30  ;;  %v1032_v22 = vadd.f32 %v1000_v33, %v708_v59 }
  0xf8   :  { %v950_v49 = vadd.f32 %v883_v2, %v821_v51  ;;  %v1112_v50 = vadd.f32 %v1080_v52, %v563_v27  ;;  %v1601_v7 = vadd.f32 %v1573_v47, %v2445_v45  ;;  %v117_v44 = vrot.slane %v85_v42, 1 }
  0xf9   :  { %v949_v8 = vadd.f32 %v884_v10, %v820_v26  ;;  %v197_v58 = vrot.slane %v165_v17, 2  ;;  %v245_v12 = vmul.f32 0.3997499, %v51_v30  ;;  %v1305_v1 = vrot.slane %v1032_v22, 6 }
  0xfa   :  { %v1236_v36 = vrot.slane %v950_v49, 6  ;;  %v1353_v18 = vrot.slane %v1112_v50, 6  ;;  %v261_v32 = vmul.f32 0.20050019, %v51_v30  ;;  %v149_v54 = vadd.f32 %v117_v44, %v69_v9 }
  0xfb   :  { %v1235_v63 = vrot.slane %v949_v8, 6  ;;  %v341_v48 = vrot.slane %v85_v42, 2  ;;  %v389_v6 = vrot.slane %v165_v17, 3  ;;  %v437_v29 = vmul.f32 0.19950019, %v52_v0 }
  0xfc   :  { %v293_v62 = vrot.slane %v261_v32, 1  ;;  %v453_v14 = vmul.f32 0.20024972, %v52_v0  ;;  %v643_v57 = vrot.slane %v261_v32, 2  ;;  %v229_v55 = vadd.f32 %v197_v58, %v149_v54 }
  0xfd   :  { %v2464_v34 = vsel %vm1195_vm5, %v1386_v61, %v1235_v63  ;;  %v1237_v38 = vsel %vm1195_vm5, %v1235_v63, %v1236_v36  ;;  %v582_v37 = vmul.f32 0.20050019, %v52_v0  ;;  %v756_v43 = vrot.slane %v85_v42, 3 }
  0xfe   :  { %v2468_v4 = vmul.f32 0.19950019, %v2464_v34  ;;  %v1418_v11 = vsel %vm600_vm1, %v1237_v38, %v1305_v1  ;;  %v325_v40 = vadd.f32 %v293_v62, %v245_v12  ;;  %v500_v2 = vrot.slane %v453_v14, 1 }
  0xff   :  { %v2472_v39 = vsel %vm471_vm0, %v1418_v11, %v1353_v18  ;;  %v644_v23 = vrot.slane %v582_v37, 2  ;;  %v757_v60 = vrot.slane %v453_v14, 3  ;;  %v885_v20 = vrot.slane %v165_v17, 4 }
 0x100   :  { %v1632_v27 = vadd.f32 %v2468_v4, %v1600_v53  ;;  %v2476_v25 = vmul.f32 0.19950019, %v2472_v39  ;;  %v373_v35 = vadd.f32 %v341_v48, %v325_v40  ;;  %v501_v10 = vsel %vm471_vm0, %v117_v44, %v500_v2 }
 0x101   :  { %v564_v13 = vadd.f32 %v501_v10, %v165_v17  ;;  %v645_v30 = vsel %vm600_vm1, %v643_v57, %v644_v23  ;;  %v758_v59 = vsel %vm713_vm2, %v756_v43, %v757_v60  ;;  %v886_v16 = vrot.slane %v437_v29, 4 }
 0x102   :  { %1657 = vst [vmem:[#allocation5 + $0xb0] sm:$0xff] %v1632_v27  ;;  %v1633_v31 = vadd.f32 %v2476_v25, %v1601_v7  ;;  %v421_v5 = vadd.f32 %v389_v6, %v373_v35  ;;  %v1550_v21 = vmul.f32 0.20050019, %v2432_v15  ;;  %v2485_v53 = vadd.f32 %v2445_v45, %v2417_v28  ;;  %v53_v15 = vld [vmem:[#allocation2 + $0xf0] sm:$0xff]  ;;  %v54_v6 = vld [vmem:[#allocation2 + $0xf8] sm:$0xff] }
 0x103   :  { %v709_v9 = vadd.f32 %v645_v30, %v564_v13  ;;  %v565_v51 = vadd.f32 %v500_v2, %v437_v29  ;;  %v969_v33 = vmul.f32 0.3997499, %v52_v0  ;;  %v887_v52 = vsel %vm842_vm3, %v885_v20, %v886_v16 }
 0x104   :  { %1658 = vst [vmem:[#allocation5 + $0xb8] sm:$0xff] %v1633_v31  ;;  %v1145_v47 = vrot.slane %v421_v5, 7  ;;  %v1574_v26 = vadd.f32 %v1550_v21, %v2405_v24  ;;  %v1049_v61 = vmul.f32 0.60025007, %v52_v0  ;;  %v1551_v22 = vmul.f32 0.20050019, %v2441_v3 }
 0x105   :  { %v822_v42 = vadd.f32 %v758_v59, %v709_v9  ;;  %v710_v17 = vadd.f32 %v644_v23, %v565_v51  ;;  %v1001_v49 = vrot.slane %v969_v33, 3  ;;  %v2492_v28 = vmul.f32 0.20024972, %v2464_v34 }
 0x106   :  { %v1387_v50 = vsel %vm1372_vm4, %v229_v55, %v1145_v47  ;;  %v1081_v45 = vrot.slane %v1049_v61, 2  ;;  %v2495_v7 = vmul.f32 0.20024972, %v2472_v39  ;;  %v1575_v24 = vadd.f32 %v1551_v22, %v2429_v46 }
 0x107   :  { %v951_v8 = vadd.f32 %v887_v52, %v822_v42  ;;  %v823_v44 = vadd.f32 %v757_v60, %v710_v17  ;;  %v1033_v58 = vadd.f32 %v1001_v49, %v710_v17  ;;  %v70_v12 = vmul.f32 0.60025007, %v53_v15 }
 0x108   :  { %v1113_v0 = vadd.f32 %v1081_v45, %v565_v51  ;;  %v86_v36 = vmul.f32 0.20024972, %v53_v15  ;;  %v166_v1 = vmul.f32 0.19950019, %v53_v15  ;;  %v1602_v18 = vadd.f32 %v2492_v28, %v1574_v26 }
 0x109   :  { %v1238_v3 = vrot.slane %v951_v8, 6  ;;  %v952_v32 = vadd.f32 %v886_v16, %v823_v44  ;;  %v1306_v63 = vrot.slane %v1033_v58, 6  ;;  %v1603_v48 = vadd.f32 %v2495_v7, %v1575_v24 }
 0x10a   :  { %v1354_v54 = vrot.slane %v1113_v0, 6  ;;  %v118_v62 = vrot.slane %v86_v36, 1  ;;  %v198_v29 = vrot.slane %v166_v1, 2  ;;  %v246_v38 = vmul.f32 0.3997499, %v53_v15 }
 0x10b   :  { %v1403_v14 = vsel %vm1195_vm5, %v1387_v50, %v1238_v3  ;;  %v1239_v57 = vrot.slane %v952_v32, 6  ;;  %v262_v46 = vmul.f32 0.20050019, %v53_v15  ;;  %v342_v11 = vrot.slane %v86_v36, 2 }
 0x10c   :  { %v1610_v55 = vmul.f32 0.19950019, %v1403_v14  ;;  %v150_v37 = vadd.f32 %v118_v62, %v70_v12  ;;  %v390_v40 = vrot.slane %v166_v1, 3  ;;  %v454_v43 = vmul.f32 0.20024972, %v54_v6 }
 0x10d   :  { %v1240_v2 = vsel %vm1195_vm5, %v1238_v3, %v1239_v57  ;;  %v294_v23 = vrot.slane %v262_v46, 1  ;;  %v583_v60 = vmul.f32 0.20050019, %v54_v6  ;;  %v438_v10 = vmul.f32 0.19950019, %v54_v6 }
 0x10e   :  { %v1634_v27 = vadd.f32 %v1610_v55, %v1602_v18  ;;  %v1419_v35 = vsel %vm600_vm1, %v1240_v2, %v1306_v63  ;;  %v646_v13 = vrot.slane %v262_v46, 2  ;;  %v502_v20 = vrot.slane %v454_v43, 1 }
 0x10f   :  { %v1435_v30 = vsel %vm471_vm0, %v1419_v35, %v1354_v54  ;;  %v326_v59 = vadd.f32 %v294_v23, %v246_v38  ;;  %v647_v31 = vrot.slane %v583_v60, 2  ;;  %v759_v16 = vrot.slane %v86_v36, 3 }
 0x110   :  { %1659 = vst [vmem:[#allocation5 + $0xc0] sm:$0xff] %v1634_v27  ;;  %v1611_v5 = vmul.f32 0.19950019, %v1435_v30  ;;  %v760_v21 = vrot.slane %v454_v43, 3  ;;  %v888_v9 = vrot.slane %v166_v1, 4  ;;  %v503_v33 = vsel %vm471_vm0, %v118_v62, %v502_v20 }
 0x111   :  { %v374_v51 = vadd.f32 %v342_v11, %v326_v59  ;;  %v648_v52 = vsel %vm600_vm1, %v646_v13, %v647_v31  ;;  %v889_v47 = vrot.slane %v438_v10, 4  ;;  %v230_v61 = vadd.f32 %v198_v29, %v150_v37 }
 0x112   :  { %v1635_v26 = vadd.f32 %v1611_v5, %v1603_v48  ;;  %v566_v42 = vadd.f32 %v503_v33, %v166_v1  ;;  %v1552_v17 = vmul.f32 0.20050019, %v2464_v34  ;;  %v761_v22 = vsel %vm713_vm2, %v759_v16, %v760_v21 }
 0x113   :  { %v422_v49 = vadd.f32 %v390_v40, %v374_v51  ;;  %v890_v15 = vsel %vm842_vm3, %v888_v9, %v889_v47  ;;  %v567_v50 = vadd.f32 %v502_v20, %v438_v10  ;;  %v1580_v8 = vmul.f32 0.20024972, %v1403_v14 }
 0x114   :  { %1660 = vst [vmem:[#allocation5 + $0xc8] sm:$0xff] %v1635_v26  ;;  %v711_v45 = vadd.f32 %v648_v52, %v566_v42  ;;  %v970_v44 = vmul.f32 0.3997499, %v54_v6  ;;  %v1050_v58 = vmul.f32 0.60025007, %v54_v6  ;;  %v1576_v0 = vadd.f32 %v1552_v17, %v2450_v41 }
 0x115   :  { %v1146_v24 = vrot.slane %v422_v49, 7  ;;  %v712_v12 = vadd.f32 %v647_v31, %v567_v50  ;;  %v1553_v36 = vmul.f32 0.20050019, %v2472_v39  ;;  %v1581_v32 = vmul.f32 0.20024972, %v1435_v30 }
 0x116   :  { %v824_v1 = vadd.f32 %v761_v22, %v711_v45  ;;  %v1002_v3 = vrot.slane %v970_v44, 3  ;;  %v1082_v34 = vrot.slane %v1050_v58, 2  ;;  %v1663_v63 = vadd.f32 %v2437_v19, %v2492_v28 }
 0x117   :  { %v825_v18 = vadd.f32 %v760_v21, %v712_v12  ;;  %v1665_v29 = vmul.f32 0.20050019, %v1403_v14  ;;  %v1388_v6 = vsel %vm1372_vm4, %v230_v61, %v1146_v24  ;;  %v1604_v57 = vadd.f32 %v1580_v8, %v1576_v0 }
 0x118   :  { %v953_v54 = vadd.f32 %v890_v15, %v824_v1  ;;  %v1034_v48 = vadd.f32 %v1002_v3, %v712_v12  ;;  %v1114_v62 = vadd.f32 %v1082_v34, %v567_v50  ;;  %v1577_v41 = vadd.f32 %v1553_v36, %v2485_v53 }
 0x119   :  { %v954_v38 = vadd.f32 %v889_v47, %v825_v18  ;;  %v1664_v55 = vadd.f32 %v2448_v56, %v2495_v7  ;;  %v1666_v37 = vmul.f32 0.20050019, %v1435_v30  ;;  %v1667_v2 = vadd.f32 %v1665_v29, %v1663_v63 }
 0x11a   :  { %v1241_v46 = vrot.slane %v953_v54, 6  ;;  %v1307_v39 = vrot.slane %v1034_v48, 6  ;;  %v1355_v40 = vrot.slane %v1114_v62, 6  ;;  %v1676_v19 = vadd.f32 %v2468_v4, %v1580_v8 }
 0x11b   :  { %v1242_v11 = vrot.slane %v954_v38, 6  ;;  %v1605_v27 = vadd.f32 %v1581_v32, %v1577_v41  ;;  %v1668_v35 = vadd.f32 %v1666_v37, %v1664_v55  ;;  %v1677_v10 = vadd.f32 %v2476_v25, %v1581_v32 }
 0x11c   :  { %v1404_v28 = vsel %vm1195_vm5, %v1388_v6, %v1241_v46 }
 0x11d   :  { %v1612_v14 = vmul.f32 0.19950019, %v1404_v28  ;;  %v1243_v23 = vsel %vm1195_vm5, %v1241_v46, %v1242_v11  ;;  %v1669_v43 = vmul.f32 0.3997499, %v1404_v28  ;;  %v1678_v60 = vmul.f32 0.60025007, %v1404_v28 }
 0x11e   :  { %v1420_v53 = vsel %vm600_vm1, %v1243_v23, %v1307_v39 }
 0x11f   :  { %v1636_v56 = vadd.f32 %v1612_v14, %v1604_v57  ;;  %v1436_v7 = vsel %vm471_vm0, %v1420_v53, %v1355_v40  ;;  %v1671_v13 = vadd.f32 %v1669_v43, %v1667_v2  ;;  %v1680_v30 = vadd.f32 %v1678_v60, %v1676_v19 }
 0x120   :  { %v1613_v4 = vmul.f32 0.19950019, %v1436_v7  ;;  %v1670_v59 = vmul.f32 0.3997499, %v1436_v7  ;;  %v1679_v20 = vmul.f32 0.60025007, %v1436_v7 }
 0x121   :  { %1661 = vst [vmem:[#allocation5 + $0xd0] sm:$0xff] %v1636_v56  ;;  %1674 = vst [vmem:[#allocation5 + $0xe0] sm:$0xff] %v1671_v13 }
 0x122   :  { %1683 = vst [vmem:[#allocation5 + $0xf0] sm:$0xff] %v1680_v30  ;;  %v1637_v31 = vadd.f32 %v1613_v4, %v1605_v27  ;;  %v1672_v5 = vadd.f32 %v1670_v59, %v1668_v35  ;;  %v1681_v16 = vadd.f32 %v1679_v20, %v1677_v10 }
 0x124   :  { %1662 = vst [vmem:[#allocation5 + $0xd8] sm:$0xff] %v1637_v31  ;;  %1675 = vst [vmem:[#allocation5 + $0xe8] sm:$0xff] %v1672_v5 }
 0x125   :  { %1684 = vst [vmem:[#allocation5 + $0xf8] sm:$0xff] %v1681_v16 }
 0x126   :  { %1739 = shalt.err (!%p1736_p12)
}
 0x127   :  { %s1740_s24 = scalar_lea.hbm %s2539_s1, 4096 }
 0x128   :  { %p1741_p13 = scmp.ne.s32.totalorder %s2539_s1, %s1740_s24  ;;  %p1744_p0 = scmp.lt.u32.totalorder %s1740_s24, %s2539_s1 }
 0x12a   :  { %p1746_p1 = pnand %p1744_p0, %p1741_p13 }
 0x12c   :  { %1749 = shalt.err (!%p1746_p1)
}
 0x12d   :  { %1696 = dma.vmem_to_hbm [thread:$0]  %s1691_s20, 4096, %s2539_s1, [#allocation4], %s1755_s16, %s1755_s16, %s1756_s17  }
 0x12e   :  { %1752 = dma.done.wait [#allocation4], 4096  }
 0x12f   :  { %1753 = vsyncadd [#allocation4], 4294963200 }
 0x130   :  { %1700 = vsyncpa [#allocation3], 1 }
 0x131   :  { %1701 = vsyncpa [#allocation4], 1 }

</bundles_post_ra>
